<compile_context>
chip_gen: v7x
topology: tpu7x:2x2x1
jax: 0.10.0
libtpu: 0.0.40
codegen_flags: <defaults>
</compile_context>

<pallas_src>
import jax
import jax.numpy as jnp
from jax import lax
from jax.experimental import pallas as pl
from jax.experimental.pallas import tpu as pltpu


# ----------------------------- Pallas kernel ------------------------------ #
def _lstm_mlp_kernel(x_ref, mu_ref, inv_std_ref,
                     w0_ref, b0_ref, w1_ref, b1_ref,
                     wih_ref, b_ref, whh_ref,
                     wl_ref, bl_ref,
                     out_ref, hs_ref):
    """Fused: normalize -> 2x (Linear+ReLU) -> LSTM (seq=B) -> Linear."""
    B = x_ref.shape[0]
    H = whh_ref.shape[0]          # true hidden size
    GP = whh_ref.shape[1] // 4    # per-gate lane-padded width (multiple of 128)

    # Input normalization: (x - mu) * inv_std   (reciprocal hoisted to wrapper)
    h = (x_ref[...] - mu_ref[...]) * inv_std_ref[...]

    # MLP hidden layers with ReLU (MXU, batched over all B rows, off the
    # serial chain -> kept f32).
    h = jnp.maximum(
        jnp.dot(h, w0_ref[...], preferred_element_type=jnp.float32) + b0_ref[...], 0.0)
    h = jnp.maximum(
        jnp.dot(h, w1_ref[...], preferred_element_type=jnp.float32) + b1_ref[...], 0.0)

    # Input-to-hidden gate pre-activations for all time steps at once.
    # Gate blocks are lane-aligned (order i, f, o, g); bih + bhh already folded.
    gates = jnp.dot(h, wih_ref[...], preferred_element_type=jnp.float32) + b_ref[...]

    whh = whh_ref[...]            # [H, 4*GP] bf16, hoisted once (padded cols zero)

    h_t = jnp.zeros((1, H), jnp.bfloat16)   # recurrent state (bf16 MXU operand)
    c_t = jnp.zeros((1, GP), jnp.float32)   # cell state, padded lanes stay 0

    # Fully unrolled recurrence: B is static, so every slice below is static.
    # (For large B, switch to gates staged in VMEM + lax.fori_loop(unroll=k).)
    for t in range(B):
        # Single-pass bf16 MXU matmul with f32 accumulation on the critical path.
        g_row = (gates[t:t + 1, :]
                 + jnp.dot(h_t, whh, preferred_element_type=jnp.float32))
        # sigmoid(x) == 0.5*tanh(0.5*x) + 0.5: one EUP op for the i|f|o block
        # (no exp + divide), applied to the contiguous lane-aligned region.
        sig = 0.5 * jnp.tanh(0.5 * g_row[:, :3 * GP]) + 0.5
        i_g = sig[:, 0 * GP:1 * GP]
        f_g = sig[:, 1 * GP:2 * GP]
        o_g = sig[:, 2 * GP:3 * GP]
        g_g = jnp.tanh(g_row[:, 3 * GP:4 * GP])
        c_t = f_g * c_t + i_g * g_g                  # padded lanes remain 0
        h_full = o_g * jnp.tanh(c_t)                 # padded lanes remain 0
        hs_ref[pl.ds(t, 1), :] = h_full              # off the serial chain
        h_t = h_full[:, :H].astype(jnp.bfloat16)     # offset-0 lane slice + cast

    # Final linear layer (output_activation = identity); wl rows padded to GP,
    # output lanes padded to a multiple of 128 -> unmasked, lane-dense store.
    out_ref[...] = (jnp.dot(hs_ref[...], wl_ref[...],
                            preferred_element_type=jnp.float32) + bl_ref[...])


# ------------------------------- Wrapper ----------------------------------- #
def _pack_gate_cols(w, H, GP):
    """Repack last dim [4H] (PyTorch order i,f,g,o) -> [4*GP] (order i,f,o,g),
    each gate zero-padded to GP lanes so gate slices are vreg-aligned."""
    i_b = w[..., 0 * H:1 * H]
    f_b = w[..., 1 * H:2 * H]
    g_b = w[..., 2 * H:3 * H]
    o_b = w[..., 3 * H:4 * H]
    pad = [(0, 0)] * (w.ndim - 1) + [(0, GP - H)]
    return jnp.concatenate(
        [jnp.pad(i_b, pad), jnp.pad(f_b, pad), jnp.pad(o_b, pad), jnp.pad(g_b, pad)],
        axis=-1)


def lstm_mlp_forward(x, params):
    (mu, std, w0, b0, w1, b1, wih, bih, whh, bhh, wl, bl) = params
    B, _ = x.shape
    H = whh.shape[0]
    O = wl.shape[1]
    GP = ((H + 127) // 128) * 128      # lane-aligned per-gate width
    OP = ((O + 127) // 128) * 128      # lane-dense output width

    # One-time host-side repacking (layout plumbing, not compute hoisting).
    inv_std = 1.0 / (std + 1e-6)
    wih_p = _pack_gate_cols(wih, H, GP)
    whh_p = _pack_gate_cols(whh, H, GP).astype(jnp.bfloat16)   # bf16 MXU operand
    b_p = _pack_gate_cols(bih + bhh, H, GP)                    # fold recurrent bias
    wl_p = jnp.pad(wl, ((0, GP - H), (0, OP - O)))             # rows -> GP, cols -> OP
    bl_p = jnp.pad(bl, ((0, 0), (0, OP - O)))

    args = (x, mu, inv_std, w0, b0, w1, b1, wih_p, b_p, whh_p, wl_p, bl_p)

    def full_spec(shape):
        return pl.BlockSpec(shape, lambda i: (0,) * len(shape))

    out_p = pl.pallas_call(
        _lstm_mlp_kernel,
        out_shape=jax.ShapeDtypeStruct((B, OP), jnp.float32),
        grid=(1,),
        in_specs=[full_spec(a.shape) for a in args],
        out_specs=full_spec((B, OP)),
        scratch_shapes=[pltpu.VMEM((B, GP), jnp.float32)],     # per-step hidden states
        compiler_params=pltpu.CompilerParams(
            dimension_semantics=("arbitrary",)),
    )(*args)
    return out_p[:, :O]


# --------------------------- Parameter creation ----------------------------- #
def make_params(key, input_size, hidden_sizes, output_size,
                b_init_value=0.1, init_w=0.003):
    assert len(hidden_sizes) == 2
    h0, h1 = hidden_sizes
    H = hidden_sizes[-1]
    keys = jax.random.split(key, 8)

    def fanin_uniform(k, fan_in, shape):
        bound = 1.0 / jnp.sqrt(fan_in)
        return jax.random.uniform(k, shape, jnp.float32, -bound, bound)

    # input stats (not trained)
    mu = jnp.zeros((1, input_size), jnp.float32)
    std = jnp.ones((1, input_size), jnp.float32)

    # fc0, fc1: fanin_init weights, bias filled with 0.1; stored as [in, out]
    w0 = fanin_uniform(keys[0], input_size, (input_size, h0))
    b0 = jnp.full((1, h0), b_init_value, jnp.float32)
    w1 = fanin_uniform(keys[1], h0, (h0, h1))
    b1 = jnp.full((1, h1), b_init_value, jnp.float32)

    # LSTM (PyTorch default init: U(-1/sqrt(H), 1/sqrt(H))), gate order i,f,g,o
    wih = fanin_uniform(keys[2], H, (H, 4 * H))   # [in, 4H]  (transposed)
    whh = fanin_uniform(keys[3], H, (H, 4 * H))
    bih = fanin_uniform(keys[4], H, (1, 4 * H))
    bhh = fanin_uniform(keys[5], H, (1, 4 * H))

    # last_fc: U(-init_w, init_w)
    wl = jax.random.uniform(keys[6], (H, output_size), jnp.float32, -init_w, init_w)
    bl = jax.random.uniform(keys[7], (1, output_size), jnp.float32, -init_w, init_w)

    return (mu, std, w0, b0, w1, b1, wih, bih, whh, bhh, wl, bl)


# ------------------------------ JAX reference ------------------------------- #
def reference_forward(x, params):
    (mu, std, w0, b0, w1, b1, wih, bih, whh, bhh, wl, bl) = params
    H = whh.shape[0]
    h = (x - mu) / (std + 1e-6)
    h = jnp.maximum(h @ w0 + b0, 0.0)
    h = jnp.maximum(h @ w1 + b1, 0.0)
    gates_x = h @ wih + bih

    def step(carry, gx):
        h_prev, c_prev = carry
        g = gx[None, :] + h_prev @ whh + bhh
        i_g = jax.nn.sigmoid(g[:, 0 * H:1 * H])
        f_g = jax.nn.sigmoid(g[:, 1 * H:2 * H])
        g_g = jnp.tanh(g[:, 2 * H:3 * H])
        o_g = jax.nn.sigmoid(g[:, 3 * H:4 * H])
        c_new = f_g * c_prev + i_g * g_g
        h_new = o_g * jnp.tanh(c_new)
        return (h_new, c_new), h_new[0]

    init = (jnp.zeros((1, H), jnp.float32), jnp.zeros((1, H), jnp.float32))
    _, hs = lax.scan(step, init, gates_x)
    return hs @ wl + bl


# ---------------------------------- Main ------------------------------------ #
if __name__ == "__main__":
    key = jax.random.PRNGKey(0)
    k_x, k_p = jax.random.split(key)

    B = 8               # batch (== LSTM sequence length, per the module's forward)
    INPUT_SIZE = 16
    HIDDEN_SIZES = (32, 32)
    OUTPUT_SIZE = 8

    x = jax.random.normal(k_x, (B, INPUT_SIZE), jnp.float32)
    params = make_params(k_p, INPUT_SIZE, HIDDEN_SIZES, OUTPUT_SIZE)

    out = jax.block_until_ready(lstm_mlp_forward(x, params))
    ref = jax.block_until_ready(reference_forward(x, params))

    assert out.shape == (B, OUTPUT_SIZE)
    # Tolerance: bf16 operands only on the recurrent matmul; final FC weights
    # are tiny (±0.003) so the induced output error stays well below 1e-4.
    assert jnp.max(jnp.abs(out - ref)) < 1e-4, "mismatch vs. JAX reference"
    print("KERNEL_OK")
</pallas_src>

<mosaic_0001>
module attributes {stable_mosaic.version = 11 : i64} {
  func.func @_lstm_mlp_kernel(%arg0: i32, %arg1: memref<8x16xf32, #tpu.memory_space<vmem>>, %arg2: memref<1x16xf32, #tpu.memory_space<vmem>>, %arg3: memref<1x16xf32, #tpu.memory_space<vmem>>, %arg4: memref<16x32xf32, #tpu.memory_space<vmem>>, %arg5: memref<1x32xf32, #tpu.memory_space<vmem>>, %arg6: memref<32x32xf32, #tpu.memory_space<vmem>>, %arg7: memref<1x32xf32, #tpu.memory_space<vmem>>, %arg8: memref<32x512xf32, #tpu.memory_space<vmem>>, %arg9: memref<1x512xf32, #tpu.memory_space<vmem>>, %arg10: memref<32x512xbf16, #tpu.memory_space<vmem>>, %arg11: memref<128x128xf32, #tpu.memory_space<vmem>>, %arg12: memref<1x128xf32, #tpu.memory_space<vmem>>, %arg13: memref<8x128xf32, #tpu.memory_space<vmem>>, %arg14: memref<8x128xf32, #tpu.memory_space<vmem>>) attributes {dimension_semantics = [#tpu.dimension_semantics<arbitrary>], iteration_bounds = array<i64: 1>, scalar_prefetch = 0 : i64, scratch_operands = 1 : i64, tpu.core_type = #tpu.core_type<tc>, window_params = [{pipeline_mode = #tpu.pipeline_mode<synchronous>, transform_indices = @transform_0, window_bounds = array<i64: 8, 16>}, {pipeline_mode = #tpu.pipeline_mode<synchronous>, transform_indices = @transform_1, window_bounds = array<i64: 1, 16>}, {pipeline_mode = #tpu.pipeline_mode<synchronous>, transform_indices = @transform_2, window_bounds = array<i64: 1, 16>}, {pipeline_mode = #tpu.pipeline_mode<synchronous>, transform_indices = @transform_3, window_bounds = array<i64: 16, 32>}, {pipeline_mode = #tpu.pipeline_mode<synchronous>, transform_indices = @transform_4, window_bounds = array<i64: 1, 32>}, {pipeline_mode = #tpu.pipeline_mode<synchronous>, transform_indices = @transform_5, window_bounds = array<i64: 32, 32>}, {pipeline_mode = #tpu.pipeline_mode<synchronous>, transform_indices = @transform_6, window_bounds = array<i64: 1, 32>}, {pipeline_mode = #tpu.pipeline_mode<synchronous>, transform_indices = @transform_7, window_bounds = array<i64: 32, 512>}, {pipeline_mode = #tpu.pipeline_mode<synchronous>, transform_indices = @transform_8, window_bounds = array<i64: 1, 512>}, {pipeline_mode = #tpu.pipeline_mode<synchronous>, transform_indices = @transform_9, window_bounds = array<i64: 32, 512>}, {pipeline_mode = #tpu.pipeline_mode<synchronous>, transform_indices = @transform_10, window_bounds = array<i64: 128, 128>}, {pipeline_mode = #tpu.pipeline_mode<synchronous>, transform_indices = @transform_11, window_bounds = array<i64: 1, 128>}, {pipeline_mode = #tpu.pipeline_mode<synchronous>, transform_indices = @transform_12, window_bounds = array<i64: 8, 128>}]} {
    %c0 = arith.constant 0 : index
    %c0_0 = arith.constant 0 : index
    %0 = vector.load %arg1[%c0, %c0_0] : memref<8x16xf32, #tpu.memory_space<vmem>>, vector<8x16xf32>
    %c0_1 = arith.constant 0 : index
    %c0_2 = arith.constant 0 : index
    %1 = vector.load %arg2[%c0_1, %c0_2] : memref<1x16xf32, #tpu.memory_space<vmem>>, vector<1x16xf32>
    %2 = vector.broadcast %1 : vector<1x16xf32> to vector<8x16xf32>
    %3 = arith.subf %0, %2 : vector<8x16xf32>
    %c0_3 = arith.constant 0 : index
    %c0_4 = arith.constant 0 : index
    %4 = vector.load %arg3[%c0_3, %c0_4] : memref<1x16xf32, #tpu.memory_space<vmem>>, vector<1x16xf32>
    %5 = vector.broadcast %4 : vector<1x16xf32> to vector<8x16xf32>
    %6 = arith.mulf %3, %5 : vector<8x16xf32>
    %c0_5 = arith.constant 0 : index
    %c0_6 = arith.constant 0 : index
    %7 = vector.load %arg4[%c0_5, %c0_6] : memref<16x32xf32, #tpu.memory_space<vmem>>, vector<16x32xf32>
    %cst = arith.constant dense<0.000000e+00> : vector<8x32xf32>
    %8 = tpu.matmul %6, %7, %cst {dimension_numbers = #tpu.dot_dimension_numbers<[1], [0], [0], [1], [0, 0, 1, 1], [], []>} : vector<8x16xf32>, vector<16x32xf32>, vector<8x32xf32> -> vector<8x32xf32>
    %c0_7 = arith.constant 0 : index
    %c0_8 = arith.constant 0 : index
    %9 = vector.load %arg5[%c0_7, %c0_8] : memref<1x32xf32, #tpu.memory_space<vmem>>, vector<1x32xf32>
    %10 = vector.broadcast %9 : vector<1x32xf32> to vector<8x32xf32>
    %11 = arith.addf %8, %10 : vector<8x32xf32>
    %cst_9 = arith.constant 0.000000e+00 : f32
    %12 = vector.broadcast %cst_9 : f32 to vector<8x32xf32>
    %13 = arith.maximumf %11, %12 : vector<8x32xf32>
    %c0_10 = arith.constant 0 : index
    %c0_11 = arith.constant 0 : index
    %14 = vector.load %arg6[%c0_10, %c0_11] : memref<32x32xf32, #tpu.memory_space<vmem>>, vector<32x32xf32>
    %cst_12 = arith.constant dense<0.000000e+00> : vector<8x32xf32>
    %15 = tpu.matmul %13, %14, %cst_12 {dimension_numbers = #tpu.dot_dimension_numbers<[1], [0], [0], [1], [0, 0, 1, 1], [], []>} : vector<8x32xf32>, vector<32x32xf32>, vector<8x32xf32> -> vector<8x32xf32>
    %c0_13 = arith.constant 0 : index
    %c0_14 = arith.constant 0 : index
    %16 = vector.load %arg7[%c0_13, %c0_14] : memref<1x32xf32, #tpu.memory_space<vmem>>, vector<1x32xf32>
    %17 = vector.broadcast %16 : vector<1x32xf32> to vector<8x32xf32>
    %18 = arith.addf %15, %17 : vector<8x32xf32>
    %cst_15 = arith.constant 0.000000e+00 : f32
    %19 = vector.broadcast %cst_15 : f32 to vector<8x32xf32>
    %20 = arith.maximumf %18, %19 : vector<8x32xf32>
    %c0_16 = arith.constant 0 : index
    %c0_17 = arith.constant 0 : index
    %21 = vector.load %arg8[%c0_16, %c0_17] : memref<32x512xf32, #tpu.memory_space<vmem>>, vector<32x512xf32>
    %cst_18 = arith.constant dense<0.000000e+00> : vector<8x512xf32>
    %22 = tpu.matmul %20, %21, %cst_18 {dimension_numbers = #tpu.dot_dimension_numbers<[1], [0], [0], [1], [0, 0, 1, 1], [], []>} : vector<8x32xf32>, vector<32x512xf32>, vector<8x512xf32> -> vector<8x512xf32>
    %c0_19 = arith.constant 0 : index
    %c0_20 = arith.constant 0 : index
    %23 = vector.load %arg9[%c0_19, %c0_20] : memref<1x512xf32, #tpu.memory_space<vmem>>, vector<1x512xf32>
    %24 = vector.broadcast %23 : vector<1x512xf32> to vector<8x512xf32>
    %25 = arith.addf %22, %24 : vector<8x512xf32>
    %c0_21 = arith.constant 0 : index
    %c0_22 = arith.constant 0 : index
    %26 = vector.load %arg10[%c0_21, %c0_22] : memref<32x512xbf16, #tpu.memory_space<vmem>>, vector<32x512xbf16>
    %cst_23 = arith.constant 0.000000e+00 : bf16
    %27 = vector.broadcast %cst_23 : bf16 to vector<1x32xbf16>
    %cst_24 = arith.constant 0.000000e+00 : f32
    %28 = vector.broadcast %cst_24 : f32 to vector<1x128xf32>
    %29 = vector.extract_strided_slice %25 {offsets = [0, 0], sizes = [1, 512], strides = [1, 1]} : vector<8x512xf32> to vector<1x512xf32>
    %cst_25 = arith.constant dense<0.000000e+00> : vector<1x512xf32>
    %30 = tpu.matmul %27, %26, %cst_25 {dimension_numbers = #tpu.dot_dimension_numbers<[1], [0], [0], [1], [0, 0, 1, 1], [], []>} : vector<1x32xbf16>, vector<32x512xbf16>, vector<1x512xf32> -> vector<1x512xf32>
    %31 = arith.addf %29, %30 : vector<1x512xf32>
    %32 = vector.extract_strided_slice %31 {offsets = [0, 0], sizes = [1, 384], strides = [1, 1]} : vector<1x512xf32> to vector<1x384xf32>
    %cst_26 = arith.constant 5.000000e-01 : f32
    %33 = vector.broadcast %cst_26 : f32 to vector<1x384xf32>
    %34 = arith.mulf %33, %32 : vector<1x384xf32>
    %35 = math.tanh %34 : vector<1x384xf32>
    %cst_27 = arith.constant 5.000000e-01 : f32
    %36 = vector.broadcast %cst_27 : f32 to vector<1x384xf32>
    %37 = arith.mulf %36, %35 : vector<1x384xf32>
    %cst_28 = arith.constant 5.000000e-01 : f32
    %38 = vector.broadcast %cst_28 : f32 to vector<1x384xf32>
    %39 = arith.addf %37, %38 : vector<1x384xf32>
    %40 = vector.extract_strided_slice %39 {offsets = [0, 0], sizes = [1, 128], strides = [1, 1]} : vector<1x384xf32> to vector<1x128xf32>
    %41 = vector.extract_strided_slice %39 {offsets = [0, 128], sizes = [1, 128], strides = [1, 1]} : vector<1x384xf32> to vector<1x128xf32>
    %42 = vector.extract_strided_slice %39 {offsets = [0, 256], sizes = [1, 128], strides = [1, 1]} : vector<1x384xf32> to vector<1x128xf32>
    %43 = vector.extract_strided_slice %31 {offsets = [0, 384], sizes = [1, 128], strides = [1, 1]} : vector<1x512xf32> to vector<1x128xf32>
    %44 = math.tanh %43 : vector<1x128xf32>
    %45 = arith.mulf %41, %28 : vector<1x128xf32>
    %46 = arith.mulf %40, %44 : vector<1x128xf32>
    %47 = arith.addf %45, %46 : vector<1x128xf32>
    %48 = math.tanh %47 : vector<1x128xf32>
    %49 = arith.mulf %42, %48 : vector<1x128xf32>
    %c0_29 = arith.constant 0 : index
    %c0_30 = arith.constant 0 : index
    %50 = vector.load %arg14[%c0_29, %c0_30] : memref<8x128xf32, #tpu.memory_space<vmem>>, vector<1x128xf32>
    tpu.vector_store %arg14[%c0_29, %c0_30], %49 {strides = array<i32>} : memref<8x128xf32, #tpu.memory_space<vmem>>, vector<1x128xf32>,
    %51 = vector.extract_strided_slice %49 {offsets = [0, 0], sizes = [1, 32], strides = [1, 1]} : vector<1x128xf32> to vector<1x32xf32>
    %52 = arith.truncf %51 : vector<1x32xf32> to vector<1x32xbf16>
    %53 = vector.extract_strided_slice %25 {offsets = [1, 0], sizes = [1, 512], strides = [1, 1]} : vector<8x512xf32> to vector<1x512xf32>
    %cst_31 = arith.constant dense<0.000000e+00> : vector<1x512xf32>
    %54 = tpu.matmul %52, %26, %cst_31 {dimension_numbers = #tpu.dot_dimension_numbers<[1], [0], [0], [1], [0, 0, 1, 1], [], []>} : vector<1x32xbf16>, vector<32x512xbf16>, vector<1x512xf32> -> vector<1x512xf32>
    %55 = arith.addf %53, %54 : vector<1x512xf32>
    %56 = vector.extract_strided_slice %55 {offsets = [0, 0], sizes = [1, 384], strides = [1, 1]} : vector<1x512xf32> to vector<1x384xf32>
    %cst_32 = arith.constant 5.000000e-01 : f32
    %57 = vector.broadcast %cst_32 : f32 to vector<1x384xf32>
    %58 = arith.mulf %57, %56 : vector<1x384xf32>
    %59 = math.tanh %58 : vector<1x384xf32>
    %cst_33 = arith.constant 5.000000e-01 : f32
    %60 = vector.broadcast %cst_33 : f32 to vector<1x384xf32>
    %61 = arith.mulf %60, %59 : vector<1x384xf32>
    %cst_34 = arith.constant 5.000000e-01 : f32
    %62 = vector.broadcast %cst_34 : f32 to vector<1x384xf32>
    %63 = arith.addf %61, %62 : vector<1x384xf32>
    %64 = vector.extract_strided_slice %63 {offsets = [0, 0], sizes = [1, 128], strides = [1, 1]} : vector<1x384xf32> to vector<1x128xf32>
    %65 = vector.extract_strided_slice %63 {offsets = [0, 128], sizes = [1, 128], strides = [1, 1]} : vector<1x384xf32> to vector<1x128xf32>
    %66 = vector.extract_strided_slice %63 {offsets = [0, 256], sizes = [1, 128], strides = [1, 1]} : vector<1x384xf32> to vector<1x128xf32>
    %67 = vector.extract_strided_slice %55 {offsets = [0, 384], sizes = [1, 128], strides = [1, 1]} : vector<1x512xf32> to vector<1x128xf32>
    %68 = math.tanh %67 : vector<1x128xf32>
    %69 = arith.mulf %65, %47 : vector<1x128xf32>
    %70 = arith.mulf %64, %68 : vector<1x128xf32>
    %71 = arith.addf %69, %70 : vector<1x128xf32>
    %72 = math.tanh %71 : vector<1x128xf32>
    %73 = arith.mulf %66, %72 : vector<1x128xf32>
    %c1 = arith.constant 1 : index
    %c0_35 = arith.constant 0 : index
    %74 = vector.load %arg14[%c1, %c0_35] : memref<8x128xf32, #tpu.memory_space<vmem>>, vector<1x128xf32>
    tpu.vector_store %arg14[%c1, %c0_35], %73 {strides = array<i32>} : memref<8x128xf32, #tpu.memory_space<vmem>>, vector<1x128xf32>,
    %75 = vector.extract_strided_slice %73 {offsets = [0, 0], sizes = [1, 32], strides = [1, 1]} : vector<1x128xf32> to vector<1x32xf32>
    %76 = arith.truncf %75 : vector<1x32xf32> to vector<1x32xbf16>
    %77 = vector.extract_strided_slice %25 {offsets = [2, 0], sizes = [1, 512], strides = [1, 1]} : vector<8x512xf32> to vector<1x512xf32>
    %cst_36 = arith.constant dense<0.000000e+00> : vector<1x512xf32>
    %78 = tpu.matmul %76, %26, %cst_36 {dimension_numbers = #tpu.dot_dimension_numbers<[1], [0], [0], [1], [0, 0, 1, 1], [], []>} : vector<1x32xbf16>, vector<32x512xbf16>, vector<1x512xf32> -> vector<1x512xf32>
    %79 = arith.addf %77, %78 : vector<1x512xf32>
    %80 = vector.extract_strided_slice %79 {offsets = [0, 0], sizes = [1, 384], strides = [1, 1]} : vector<1x512xf32> to vector<1x384xf32>
    %cst_37 = arith.constant 5.000000e-01 : f32
    %81 = vector.broadcast %cst_37 : f32 to vector<1x384xf32>
    %82 = arith.mulf %81, %80 : vector<1x384xf32>
    %83 = math.tanh %82 : vector<1x384xf32>
    %cst_38 = arith.constant 5.000000e-01 : f32
    %84 = vector.broadcast %cst_38 : f32 to vector<1x384xf32>
    %85 = arith.mulf %84, %83 : vector<1x384xf32>
    %cst_39 = arith.constant 5.000000e-01 : f32
    %86 = vector.broadcast %cst_39 : f32 to vector<1x384xf32>
    %87 = arith.addf %85, %86 : vector<1x384xf32>
    %88 = vector.extract_strided_slice %87 {offsets = [0, 0], sizes = [1, 128], strides = [1, 1]} : vector<1x384xf32> to vector<1x128xf32>
    %89 = vector.extract_strided_slice %87 {offsets = [0, 128], sizes = [1, 128], strides = [1, 1]} : vector<1x384xf32> to vector<1x128xf32>
    %90 = vector.extract_strided_slice %87 {offsets = [0, 256], sizes = [1, 128], strides = [1, 1]} : vector<1x384xf32> to vector<1x128xf32>
    %91 = vector.extract_strided_slice %79 {offsets = [0, 384], sizes = [1, 128], strides = [1, 1]} : vector<1x512xf32> to vector<1x128xf32>
    %92 = math.tanh %91 : vector<1x128xf32>
    %93 = arith.mulf %89, %71 : vector<1x128xf32>
    %94 = arith.mulf %88, %92 : vector<1x128xf32>
    %95 = arith.addf %93, %94 : vector<1x128xf32>
    %96 = math.tanh %95 : vector<1x128xf32>
    %97 = arith.mulf %90, %96 : vector<1x128xf32>
    %c2 = arith.constant 2 : index
    %c0_40 = arith.constant 0 : index
    %98 = vector.load %arg14[%c2, %c0_40] : memref<8x128xf32, #tpu.memory_space<vmem>>, vector<1x128xf32>
    tpu.vector_store %arg14[%c2, %c0_40], %97 {strides = array<i32>} : memref<8x128xf32, #tpu.memory_space<vmem>>, vector<1x128xf32>,
    %99 = vector.extract_strided_slice %97 {offsets = [0, 0], sizes = [1, 32], strides = [1, 1]} : vector<1x128xf32> to vector<1x32xf32>
    %100 = arith.truncf %99 : vector<1x32xf32> to vector<1x32xbf16>
    %101 = vector.extract_strided_slice %25 {offsets = [3, 0], sizes = [1, 512], strides = [1, 1]} : vector<8x512xf32> to vector<1x512xf32>
    %cst_41 = arith.constant dense<0.000000e+00> : vector<1x512xf32>
    %102 = tpu.matmul %100, %26, %cst_41 {dimension_numbers = #tpu.dot_dimension_numbers<[1], [0], [0], [1], [0, 0, 1, 1], [], []>} : vector<1x32xbf16>, vector<32x512xbf16>, vector<1x512xf32> -> vector<1x512xf32>
    %103 = arith.addf %101, %102 : vector<1x512xf32>
    %104 = vector.extract_strided_slice %103 {offsets = [0, 0], sizes = [1, 384], strides = [1, 1]} : vector<1x512xf32> to vector<1x384xf32>
    %cst_42 = arith.constant 5.000000e-01 : f32
    %105 = vector.broadcast %cst_42 : f32 to vector<1x384xf32>
    %106 = arith.mulf %105, %104 : vector<1x384xf32>
    %107 = math.tanh %106 : vector<1x384xf32>
    %cst_43 = arith.constant 5.000000e-01 : f32
    %108 = vector.broadcast %cst_43 : f32 to vector<1x384xf32>
    %109 = arith.mulf %108, %107 : vector<1x384xf32>
    %cst_44 = arith.constant 5.000000e-01 : f32
    %110 = vector.broadcast %cst_44 : f32 to vector<1x384xf32>
    %111 = arith.addf %109, %110 : vector<1x384xf32>
    %112 = vector.extract_strided_slice %111 {offsets = [0, 0], sizes = [1, 128], strides = [1, 1]} : vector<1x384xf32> to vector<1x128xf32>
    %113 = vector.extract_strided_slice %111 {offsets = [0, 128], sizes = [1, 128], strides = [1, 1]} : vector<1x384xf32> to vector<1x128xf32>
    %114 = vector.extract_strided_slice %111 {offsets = [0, 256], sizes = [1, 128], strides = [1, 1]} : vector<1x384xf32> to vector<1x128xf32>
    %115 = vector.extract_strided_slice %103 {offsets = [0, 384], sizes = [1, 128], strides = [1, 1]} : vector<1x512xf32> to vector<1x128xf32>
    %116 = math.tanh %115 : vector<1x128xf32>
    %117 = arith.mulf %113, %95 : vector<1x128xf32>
    %118 = arith.mulf %112, %116 : vector<1x128xf32>
    %119 = arith.addf %117, %118 : vector<1x128xf32>
    %120 = math.tanh %119 : vector<1x128xf32>
    %121 = arith.mulf %114, %120 : vector<1x128xf32>
    %c3 = arith.constant 3 : index
    %c0_45 = arith.constant 0 : index
    %122 = vector.load %arg14[%c3, %c0_45] : memref<8x128xf32, #tpu.memory_space<vmem>>, vector<1x128xf32>
    tpu.vector_store %arg14[%c3, %c0_45], %121 {strides = array<i32>} : memref<8x128xf32, #tpu.memory_space<vmem>>, vector<1x128xf32>,
    %123 = vector.extract_strided_slice %121 {offsets = [0, 0], sizes = [1, 32], strides = [1, 1]} : vector<1x128xf32> to vector<1x32xf32>
    %124 = arith.truncf %123 : vector<1x32xf32> to vector<1x32xbf16>
    %125 = vector.extract_strided_slice %25 {offsets = [4, 0], sizes = [1, 512], strides = [1, 1]} : vector<8x512xf32> to vector<1x512xf32>
    %cst_46 = arith.constant dense<0.000000e+00> : vector<1x512xf32>
    %126 = tpu.matmul %124, %26, %cst_46 {dimension_numbers = #tpu.dot_dimension_numbers<[1], [0], [0], [1], [0, 0, 1, 1], [], []>} : vector<1x32xbf16>, vector<32x512xbf16>, vector<1x512xf32> -> vector<1x512xf32>
    %127 = arith.addf %125, %126 : vector<1x512xf32>
    %128 = vector.extract_strided_slice %127 {offsets = [0, 0], sizes = [1, 384], strides = [1, 1]} : vector<1x512xf32> to vector<1x384xf32>
    %cst_47 = arith.constant 5.000000e-01 : f32
    %129 = vector.broadcast %cst_47 : f32 to vector<1x384xf32>
    %130 = arith.mulf %129, %128 : vector<1x384xf32>
    %131 = math.tanh %130 : vector<1x384xf32>
    %cst_48 = arith.constant 5.000000e-01 : f32
    %132 = vector.broadcast %cst_48 : f32 to vector<1x384xf32>
    %133 = arith.mulf %132, %131 : vector<1x384xf32>
    %cst_49 = arith.constant 5.000000e-01 : f32
    %134 = vector.broadcast %cst_49 : f32 to vector<1x384xf32>
    %135 = arith.addf %133, %134 : vector<1x384xf32>
    %136 = vector.extract_strided_slice %135 {offsets = [0, 0], sizes = [1, 128], strides = [1, 1]} : vector<1x384xf32> to vector<1x128xf32>
    %137 = vector.extract_strided_slice %135 {offsets = [0, 128], sizes = [1, 128], strides = [1, 1]} : vector<1x384xf32> to vector<1x128xf32>
    %138 = vector.extract_strided_slice %135 {offsets = [0, 256], sizes = [1, 128], strides = [1, 1]} : vector<1x384xf32> to vector<1x128xf32>
    %139 = vector.extract_strided_slice %127 {offsets = [0, 384], sizes = [1, 128], strides = [1, 1]} : vector<1x512xf32> to vector<1x128xf32>
    %140 = math.tanh %139 : vector<1x128xf32>
    %141 = arith.mulf %137, %119 : vector<1x128xf32>
    %142 = arith.mulf %136, %140 : vector<1x128xf32>
    %143 = arith.addf %141, %142 : vector<1x128xf32>
    %144 = math.tanh %143 : vector<1x128xf32>
    %145 = arith.mulf %138, %144 : vector<1x128xf32>
    %c4 = arith.constant 4 : index
    %c0_50 = arith.constant 0 : index
    %146 = vector.load %arg14[%c4, %c0_50] : memref<8x128xf32, #tpu.memory_space<vmem>>, vector<1x128xf32>
    tpu.vector_store %arg14[%c4, %c0_50], %145 {strides = array<i32>} : memref<8x128xf32, #tpu.memory_space<vmem>>, vector<1x128xf32>,
    %147 = vector.extract_strided_slice %145 {offsets = [0, 0], sizes = [1, 32], strides = [1, 1]} : vector<1x128xf32> to vector<1x32xf32>
    %148 = arith.truncf %147 : vector<1x32xf32> to vector<1x32xbf16>
    %149 = vector.extract_strided_slice %25 {offsets = [5, 0], sizes = [1, 512], strides = [1, 1]} : vector<8x512xf32> to vector<1x512xf32>
    %cst_51 = arith.constant dense<0.000000e+00> : vector<1x512xf32>
    %150 = tpu.matmul %148, %26, %cst_51 {dimension_numbers = #tpu.dot_dimension_numbers<[1], [0], [0], [1], [0, 0, 1, 1], [], []>} : vector<1x32xbf16>, vector<32x512xbf16>, vector<1x512xf32> -> vector<1x512xf32>
    %151 = arith.addf %149, %150 : vector<1x512xf32>
    %152 = vector.extract_strided_slice %151 {offsets = [0, 0], sizes = [1, 384], strides = [1, 1]} : vector<1x512xf32> to vector<1x384xf32>
    %cst_52 = arith.constant 5.000000e-01 : f32
    %153 = vector.broadcast %cst_52 : f32 to vector<1x384xf32>
    %154 = arith.mulf %153, %152 : vector<1x384xf32>
    %155 = math.tanh %154 : vector<1x384xf32>
    %cst_53 = arith.constant 5.000000e-01 : f32
    %156 = vector.broadcast %cst_53 : f32 to vector<1x384xf32>
    %157 = arith.mulf %156, %155 : vector<1x384xf32>
    %cst_54 = arith.constant 5.000000e-01 : f32
    %158 = vector.broadcast %cst_54 : f32 to vector<1x384xf32>
    %159 = arith.addf %157, %158 : vector<1x384xf32>
    %160 = vector.extract_strided_slice %159 {offsets = [0, 0], sizes = [1, 128], strides = [1, 1]} : vector<1x384xf32> to vector<1x128xf32>
    %161 = vector.extract_strided_slice %159 {offsets = [0, 128], sizes = [1, 128], strides = [1, 1]} : vector<1x384xf32> to vector<1x128xf32>
    %162 = vector.extract_strided_slice %159 {offsets = [0, 256], sizes = [1, 128], strides = [1, 1]} : vector<1x384xf32> to vector<1x128xf32>
    %163 = vector.extract_strided_slice %151 {offsets = [0, 384], sizes = [1, 128], strides = [1, 1]} : vector<1x512xf32> to vector<1x128xf32>
    %164 = math.tanh %163 : vector<1x128xf32>
    %165 = arith.mulf %161, %143 : vector<1x128xf32>
    %166 = arith.mulf %160, %164 : vector<1x128xf32>
    %167 = arith.addf %165, %166 : vector<1x128xf32>
    %168 = math.tanh %167 : vector<1x128xf32>
    %169 = arith.mulf %162, %168 : vector<1x128xf32>
    %c5 = arith.constant 5 : index
    %c0_55 = arith.constant 0 : index
    %170 = vector.load %arg14[%c5, %c0_55] : memref<8x128xf32, #tpu.memory_space<vmem>>, vector<1x128xf32>
    tpu.vector_store %arg14[%c5, %c0_55], %169 {strides = array<i32>} : memref<8x128xf32, #tpu.memory_space<vmem>>, vector<1x128xf32>,
    %171 = vector.extract_strided_slice %169 {offsets = [0, 0], sizes = [1, 32], strides = [1, 1]} : vector<1x128xf32> to vector<1x32xf32>
    %172 = arith.truncf %171 : vector<1x32xf32> to vector<1x32xbf16>
    %173 = vector.extract_strided_slice %25 {offsets = [6, 0], sizes = [1, 512], strides = [1, 1]} : vector<8x512xf32> to vector<1x512xf32>
    %cst_56 = arith.constant dense<0.000000e+00> : vector<1x512xf32>
    %174 = tpu.matmul %172, %26, %cst_56 {dimension_numbers = #tpu.dot_dimension_numbers<[1], [0], [0], [1], [0, 0, 1, 1], [], []>} : vector<1x32xbf16>, vector<32x512xbf16>, vector<1x512xf32> -> vector<1x512xf32>
    %175 = arith.addf %173, %174 : vector<1x512xf32>
    %176 = vector.extract_strided_slice %175 {offsets = [0, 0], sizes = [1, 384], strides = [1, 1]} : vector<1x512xf32> to vector<1x384xf32>
    %cst_57 = arith.constant 5.000000e-01 : f32
    %177 = vector.broadcast %cst_57 : f32 to vector<1x384xf32>
    %178 = arith.mulf %177, %176 : vector<1x384xf32>
    %179 = math.tanh %178 : vector<1x384xf32>
    %cst_58 = arith.constant 5.000000e-01 : f32
    %180 = vector.broadcast %cst_58 : f32 to vector<1x384xf32>
    %181 = arith.mulf %180, %179 : vector<1x384xf32>
    %cst_59 = arith.constant 5.000000e-01 : f32
    %182 = vector.broadcast %cst_59 : f32 to vector<1x384xf32>
    %183 = arith.addf %181, %182 : vector<1x384xf32>
    %184 = vector.extract_strided_slice %183 {offsets = [0, 0], sizes = [1, 128], strides = [1, 1]} : vector<1x384xf32> to vector<1x128xf32>
    %185 = vector.extract_strided_slice %183 {offsets = [0, 128], sizes = [1, 128], strides = [1, 1]} : vector<1x384xf32> to vector<1x128xf32>
    %186 = vector.extract_strided_slice %183 {offsets = [0, 256], sizes = [1, 128], strides = [1, 1]} : vector<1x384xf32> to vector<1x128xf32>
    %187 = vector.extract_strided_slice %175 {offsets = [0, 384], sizes = [1, 128], strides = [1, 1]} : vector<1x512xf32> to vector<1x128xf32>
    %188 = math.tanh %187 : vector<1x128xf32>
    %189 = arith.mulf %185, %167 : vector<1x128xf32>
    %190 = arith.mulf %184, %188 : vector<1x128xf32>
    %191 = arith.addf %189, %190 : vector<1x128xf32>
    %192 = math.tanh %191 : vector<1x128xf32>
    %193 = arith.mulf %186, %192 : vector<1x128xf32>
    %c6 = arith.constant 6 : index
    %c0_60 = arith.constant 0 : index
    %194 = vector.load %arg14[%c6, %c0_60] : memref<8x128xf32, #tpu.memory_space<vmem>>, vector<1x128xf32>
    tpu.vector_store %arg14[%c6, %c0_60], %193 {strides = array<i32>} : memref<8x128xf32, #tpu.memory_space<vmem>>, vector<1x128xf32>,
    %195 = vector.extract_strided_slice %193 {offsets = [0, 0], sizes = [1, 32], strides = [1, 1]} : vector<1x128xf32> to vector<1x32xf32>
    %196 = arith.truncf %195 : vector<1x32xf32> to vector<1x32xbf16>
    %197 = vector.extract_strided_slice %25 {offsets = [7, 0], sizes = [1, 512], strides = [1, 1]} : vector<8x512xf32> to vector<1x512xf32>
    %cst_61 = arith.constant dense<0.000000e+00> : vector<1x512xf32>
    %198 = tpu.matmul %196, %26, %cst_61 {dimension_numbers = #tpu.dot_dimension_numbers<[1], [0], [0], [1], [0, 0, 1, 1], [], []>} : vector<1x32xbf16>, vector<32x512xbf16>, vector<1x512xf32> -> vector<1x512xf32>
    %199 = arith.addf %197, %198 : vector<1x512xf32>
    %200 = vector.extract_strided_slice %199 {offsets = [0, 0], sizes = [1, 384], strides = [1, 1]} : vector<1x512xf32> to vector<1x384xf32>
    %cst_62 = arith.constant 5.000000e-01 : f32
    %201 = vector.broadcast %cst_62 : f32 to vector<1x384xf32>
    %202 = arith.mulf %201, %200 : vector<1x384xf32>
    %203 = math.tanh %202 : vector<1x384xf32>
    %cst_63 = arith.constant 5.000000e-01 : f32
    %204 = vector.broadcast %cst_63 : f32 to vector<1x384xf32>
    %205 = arith.mulf %204, %203 : vector<1x384xf32>
    %cst_64 = arith.constant 5.000000e-01 : f32
    %206 = vector.broadcast %cst_64 : f32 to vector<1x384xf32>
    %207 = arith.addf %205, %206 : vector<1x384xf32>
    %208 = vector.extract_strided_slice %207 {offsets = [0, 0], sizes = [1, 128], strides = [1, 1]} : vector<1x384xf32> to vector<1x128xf32>
    %209 = vector.extract_strided_slice %207 {offsets = [0, 128], sizes = [1, 128], strides = [1, 1]} : vector<1x384xf32> to vector<1x128xf32>
    %210 = vector.extract_strided_slice %207 {offsets = [0, 256], sizes = [1, 128], strides = [1, 1]} : vector<1x384xf32> to vector<1x128xf32>
    %211 = vector.extract_strided_slice %199 {offsets = [0, 384], sizes = [1, 128], strides = [1, 1]} : vector<1x512xf32> to vector<1x128xf32>
    %212 = math.tanh %211 : vector<1x128xf32>
    %213 = arith.mulf %209, %191 : vector<1x128xf32>
    %214 = arith.mulf %208, %212 : vector<1x128xf32>
    %215 = arith.addf %213, %214 : vector<1x128xf32>
    %216 = math.tanh %215 : vector<1x128xf32>
    %217 = arith.mulf %210, %216 : vector<1x128xf32>
    %c7 = arith.constant 7 : index
    %c0_65 = arith.constant 0 : index
    %218 = vector.load %arg14[%c7, %c0_65] : memref<8x128xf32, #tpu.memory_space<vmem>>, vector<1x128xf32>
    tpu.vector_store %arg14[%c7, %c0_65], %217 {strides = array<i32>} : memref<8x128xf32, #tpu.memory_space<vmem>>, vector<1x128xf32>,
    %c0_66 = arith.constant 0 : index
    %c0_67 = arith.constant 0 : index
    %219 = vector.load %arg14[%c0_66, %c0_67] : memref<8x128xf32, #tpu.memory_space<vmem>>, vector<8x128xf32>
    %c0_68 = arith.constant 0 : index
    %c0_69 = arith.constant 0 : index
    %220 = vector.load %arg11[%c0_68, %c0_69] : memref<128x128xf32, #tpu.memory_space<vmem>>, vector<128x128xf32>
    %cst_70 = arith.constant dense<0.000000e+00> : vector<8x128xf32>
    %221 = tpu.matmul %219, %220, %cst_70 {dimension_numbers = #tpu.dot_dimension_numbers<[1], [0], [0], [1], [0, 0, 1, 1], [], []>} : vector<8x128xf32>, vector<128x128xf32>, vector<8x128xf32> -> vector<8x128xf32>
    %c0_71 = arith.constant 0 : index
    %c0_72 = arith.constant 0 : index
    %222 = vector.load %arg12[%c0_71, %c0_72] : memref<1x128xf32, #tpu.memory_space<vmem>>, vector<1x128xf32>
    %223 = vector.broadcast %222 : vector<1x128xf32> to vector<8x128xf32>
    %224 = arith.addf %221, %223 : vector<8x128xf32>
    %c0_73 = arith.constant 0 : index
    %c0_74 = arith.constant 0 : index
    %225 = vector.load %arg13[%c0_73, %c0_74] : memref<8x128xf32, #tpu.memory_space<vmem>>, vector<8x128xf32>
    tpu.vector_store %arg13[%c0_73, %c0_74], %224 {strides = array<i32>} : memref<8x128xf32, #tpu.memory_space<vmem>>, vector<8x128xf32>,
    return
  }
  func.func @transform_0(%arg0: i32) -> (i32, i32) {
    %c0_i32 = arith.constant 0 : i32
    %c0_i32_0 = arith.constant 0 : i32
    %c0_i32_1 = arith.constant 0 : i32
    return %c0_i32, %c0_i32_0 : i32, i32
  }
  func.func @transform_1(%arg0: i32) -> (i32, i32) {
    %c0_i32 = arith.constant 0 : i32
    %c0_i32_0 = arith.constant 0 : i32
    %c0_i32_1 = arith.constant 0 : i32
    return %c0_i32, %c0_i32_0 : i32, i32
  }
  func.func @transform_2(%arg0: i32) -> (i32, i32) {
    %c0_i32 = arith.constant 0 : i32
    %c0_i32_0 = arith.constant 0 : i32
    %c0_i32_1 = arith.constant 0 : i32
    return %c0_i32, %c0_i32_0 : i32, i32
  }
  func.func @transform_3(%arg0: i32) -> (i32, i32) {
    %c0_i32 = arith.constant 0 : i32
    %c0_i32_0 = arith.constant 0 : i32
    %c0_i32_1 = arith.constant 0 : i32
    return %c0_i32, %c0_i32_0 : i32, i32
  }
  func.func @transform_4(%arg0: i32) -> (i32, i32) {
    %c0_i32 = arith.constant 0 : i32
    %c0_i32_0 = arith.constant 0 : i32
    %c0_i32_1 = arith.constant 0 : i32
    return %c0_i32, %c0_i32_0 : i32, i32
  }
  func.func @transform_5(%arg0: i32) -> (i32, i32) {
    %c0_i32 = arith.constant 0 : i32
    %c0_i32_0 = arith.constant 0 : i32
    %c0_i32_1 = arith.constant 0 : i32
    return %c0_i32, %c0_i32_0 : i32, i32
  }
  func.func @transform_6(%arg0: i32) -> (i32, i32) {
    %c0_i32 = arith.constant 0 : i32
    %c0_i32_0 = arith.constant 0 : i32
    %c0_i32_1 = arith.constant 0 : i32
    return %c0_i32, %c0_i32_0 : i32, i32
  }
  func.func @transform_7(%arg0: i32) -> (i32, i32) {
    %c0_i32 = arith.constant 0 : i32
    %c0_i32_0 = arith.constant 0 : i32
    %c0_i32_1 = arith.constant 0 : i32
    return %c0_i32, %c0_i32_0 : i32, i32
  }
  func.func @transform_8(%arg0: i32) -> (i32, i32) {
    %c0_i32 = arith.constant 0 : i32
    %c0_i32_0 = arith.constant 0 : i32
    %c0_i32_1 = arith.constant 0 : i32
    return %c0_i32, %c0_i32_0 : i32, i32
  }
  func.func @transform_9(%arg0: i32) -> (i32, i32) {
    %c0_i32 = arith.constant 0 : i32
    %c0_i32_0 = arith.constant 0 : i32
    %c0_i32_1 = arith.constant 0 : i32
    return %c0_i32, %c0_i32_0 : i32, i32
  }
  func.func @transform_10(%arg0: i32) -> (i32, i32) {
    %c0_i32 = arith.constant 0 : i32
    %c0_i32_0 = arith.constant 0 : i32
    %c0_i32_1 = arith.constant 0 : i32
    return %c0_i32, %c0_i32_0 : i32, i32
  }
  func.func @transform_11(%arg0: i32) -> (i32, i32) {
    %c0_i32 = arith.constant 0 : i32
    %c0_i32_0 = arith.constant 0 : i32
    %c0_i32_1 = arith.constant 0 : i32
    return %c0_i32, %c0_i32_0 : i32, i32
  }
  func.func @transform_12(%arg0: i32) -> (i32, i32) {
    %c0_i32 = arith.constant 0 : i32
    %c0_i32_0 = arith.constant 0 : i32
    %c0_i32_1 = arith.constant 0 : i32
    return %c0_i32, %c0_i32_0 : i32, i32
  }
}

</mosaic_0001>

<bundles_post_ra>
// kernel: tpu_custom_call.1
= control target key start
LH: loop header
LB: loop body
LE: loop exit
PB: predicated region body
PF: predicated region fallthrough
CT: control target
= control target key end

     0   :  { %17 = vsyncpa [#allocation4], 0  ;;  %s2456_s0 = inlined_call_operand.hbm [shape: f32[8,16], index: 0, kind: input, shape index: {}]   ;;  %s2457_s1 = inlined_call_operand.vmem [shape: f32[1,16], index: 1, kind: input, shape index: {}]   ;;  %s2458_s2 = inlined_call_operand.vmem [shape: f32[1,16], index: 2, kind: input, shape index: {}]   ;;  %s2459_s3 = inlined_call_operand.hbm [shape: f32[16,32], index: 3, kind: input, shape index: {}]   ;;  %s2460_s4 = inlined_call_operand.vmem [shape: f32[1,32], index: 4, kind: input, shape index: {}]   ;;  %s2461_s5 = inlined_call_operand.hbm [shape: f32[32,32], index: 5, kind: input, shape index: {}]   ;;  %s2462_s6 = inlined_call_operand.vmem [shape: f32[1,32], index: 6, kind: input, shape index: {}]   ;;  %s2463_s7 = inlined_call_operand.hbm [shape: f32[32,512], index: 7, kind: input, shape index: {}]   ;;  %s2464_s8 = inlined_call_operand.vmem [shape: f32[1,512], index: 8, kind: input, shape index: {}]   ;;  %s2465_s9 = inlined_call_operand.hbm [shape: bf16[32,512], index: 9, kind: input, shape index: {}]   ;;  %s2466_s10 = inlined_call_operand.hbm [shape: f32[128,128], index: 10, kind: input, shape index: {}]   ;;  %s2467_s11 = inlined_call_operand.vmem [shape: f32[1,128], index: 11, kind: input, shape index: {}]   ;;  %s2468_s12 = inlined_call_operand.hbm [shape: f32[8,128], index: 12, kind: output, shape index: {}]  }
   0x1   :  { %18 = vsyncpa [#allocation7], 0 }
   0x2   :  { %19 = vsyncpa [#allocation10], 0 }
   0x3   :  { %20 = vsyncpa [#allocation13], 0 }
   0x4   :  { %21 = vsyncpa [#allocation5], 0  ;;  %s2078_s21 = smov [#allocation6]   ;;  %s1914_s25 = scalar_lea.hbm %s2459_s3, 256 }
   0x5   :  { %s41_s22 = sshll.u32 %s2078_s21, 4  ;;  %p1915_p0 = scmp.ne.s32.totalorder %s2459_s3, %s1914_s25  ;;  %s42_s22 = int_to_ptr.vmem [resolvable:$true] %s41_s22 }
   0x6   :  { %p1918_p1 = scmp.lt.u32.totalorder %s1914_s25, %s2459_s3 }
   0x8   :  { %p1920_p2 = pnand %p1918_p1, %p1915_p0 }
   0xa   :  { %1923 = shalt.err (!%p1920_p2)
}
   0xb   :  { %s1924_s30 = scalar_lea.vmem %s42_s22, 256  ;;  %p1929_p4 = scmp.lt.s32.totalorder %s42_s22, %s42_s22 }
   0xc   :  { %p1925_p3 = scmp.ne.s32.totalorder %s42_s22, %s1924_s30  ;;  %p1930_p5 = scmp.lt.s32.totalorder %s1924_s30, %s1924_s30 }
   0xe   :  { %p1931_p6 = por %p1930_p5, %p1929_p4 }
  0x10   :  { %p1932_p7 = pnand %p1931_p6, %p1925_p3 }
  0x12   :  { %1935 = shalt.err (!%p1932_p7)
}
  0x13   :  { %s2079_s13 = smov 128   ;;  %s2080_s14 = smov 8  }
  0x14   :  { %47 = dma.hbm_to_vmem [thread:$0]  %s2459_s3, 256, %s42_s22, [#allocation7], %s2079_s13, %s2079_s13, %s2080_s14  }
  0x15   :  { %s2081_s17 = smov [#allocation9]   ;;  %s1936_s21 = scalar_lea.hbm %s2463_s7, 2048 }
  0x16   :  { %s69_s18 = sshll.u32 %s2081_s17, 4  ;;  %p1937_p8 = scmp.ne.s32.totalorder %s2463_s7, %s1936_s21  ;;  %s70_s18 = int_to_ptr.vmem [resolvable:$true] %s69_s18 }
  0x17   :  { %p1940_p9 = scmp.lt.u32.totalorder %s1936_s21, %s2463_s7 }
  0x19   :  { %p1942_p10 = pnand %p1940_p9, %p1937_p8 }
  0x1b   :  { %1945 = shalt.err (!%p1942_p10)
}
  0x1c   :  { %s1946_s27 = scalar_lea.vmem %s70_s18, 2048  ;;  %p1951_p12 = scmp.lt.s32.totalorder %s70_s18, %s70_s18 }
  0x1d   :  { %p1947_p11 = scmp.ne.s32.totalorder %s70_s18, %s1946_s27  ;;  %p1952_p13 = scmp.lt.s32.totalorder %s1946_s27, %s1946_s27 }
  0x1f   :  { %p1953_p0 = por %p1952_p13, %p1951_p12 }
  0x21   :  { %p1954_p1 = pnand %p1953_p0, %p1947_p11 }
  0x23   :  { %1957 = shalt.err (!%p1954_p1)
}
  0x24   :  { %s2082_s3 = smov 512   ;;  %s2083_s22 = smov 32  }
  0x25   :  { %75 = dma.hbm_to_vmem [thread:$0]  %s2463_s7, 2048, %s70_s18, [#allocation10], %s2082_s3, %s2082_s3, %s2083_s22  }
  0x26   :  { %s2084_s30 = smov [#allocation3]   ;;  %s2085_s16 = smov [#allocation8]  }
  0x27   :  { %s28_s15 = sshll.u32 %s2084_s30, 4  ;;  %s55_s17 = sshll.u32 %s2085_s16, 4  ;;  %s29_s15 = int_to_ptr.vmem [resolvable:$true] %s28_s15  ;;  %s2187_s17 = int_to_ptr.vmem [resolvable:$true] %s55_s17 }
  0x28   :  { %s1958_s21 = scalar_lea.hbm %s2456_s0, 128 }
  0x29   :  { %p1959_p2 = scmp.ne.s32.totalorder %s2456_s0, %s1958_s21  ;;  %p1962_p3 = scmp.lt.u32.totalorder %s1958_s21, %s2456_s0 }
  0x2b   :  { %p1964_p4 = pnand %p1962_p3, %p1959_p2 }
  0x2d   :  { %1967 = shalt.err (!%p1964_p4)
}
  0x2e   :  { %s1968_s7 = scalar_lea.vmem %s29_s15, 128  ;;  %p1973_p6 = scmp.lt.s32.totalorder %s29_s15, %s29_s15 }
  0x2f   :  { %p1969_p5 = scmp.ne.s32.totalorder %s29_s15, %s1968_s7  ;;  %p1974_p7 = scmp.lt.s32.totalorder %s1968_s7, %s1968_s7 }
  0x31   :  { %p1975_p8 = por %p1974_p7, %p1973_p6 }
  0x33   :  { %p1976_p9 = pnand %p1975_p8, %p1969_p5 }
  0x35   :  { %1979 = shalt.err (!%p1976_p9)
}
  0x36   :  { %31 = dma.hbm_to_vmem [thread:$0]  %s2456_s0, 128, %s29_s15, [#allocation4]  }
  0x37   :  { %s1980_s28 = scalar_lea.hbm %s2461_s5, 512 }
  0x38   :  { %p1981_p10 = scmp.ne.s32.totalorder %s2461_s5, %s1980_s28  ;;  %p1984_p11 = scmp.lt.u32.totalorder %s1980_s28, %s2461_s5 }
  0x3a   :  { %p1986_p12 = pnand %p1984_p11, %p1981_p10 }
  0x3c   :  { %1989 = shalt.err (!%p1986_p12)
}
  0x3d   :  { %s1990_s20 = scalar_lea.vmem %s2187_s17, 512  ;;  %p1995_p0 = scmp.lt.s32.totalorder %s2187_s17, %s2187_s17 }
  0x3e   :  { %p1991_p13 = scmp.ne.s32.totalorder %s2187_s17, %s1990_s20  ;;  %p1996_p1 = scmp.lt.s32.totalorder %s1990_s20, %s1990_s20 }
  0x40   :  { %p1997_p2 = por %p1996_p1, %p1995_p0 }
  0x42   :  { %p1998_p3 = pnand %p1997_p2, %p1991_p13 }
  0x44   :  { %2001 = shalt.err (!%p1998_p3)
}
  0x45   :  { %61 = dma.hbm_to_vmem [thread:$0]  %s2461_s5, 512, %s2187_s17, [#allocation7], %s2079_s13, %s2079_s13, %s2080_s14  }
  0x46   :  { %s2086_s21 = smov [#allocation11]   ;;  %s2002_s26 = scalar_lea.hbm %s2465_s9, 1024 }
  0x47   :  { %s83_s23 = sshll.u32 %s2086_s21, 4  ;;  %p2003_p4 = scmp.ne.s32.totalorder %s2465_s9, %s2002_s26  ;;  %s84_s23 = int_to_ptr.vmem [resolvable:$true] %s83_s23 }
  0x48   :  { %p2006_p5 = scmp.lt.u32.totalorder %s2002_s26, %s2465_s9 }
  0x4a   :  { %p2008_p6 = pnand %p2006_p5, %p2003_p4 }
  0x4c   :  { %2011 = shalt.err (!%p2008_p6)
}
  0x4d   :  { %s2012_s22 = scalar_lea.vmem %s84_s23, 1024  ;;  %p2017_p8 = scmp.lt.s32.totalorder %s84_s23, %s84_s23 }
  0x4e   :  { %p2013_p7 = scmp.ne.s32.totalorder %s84_s23, %s2012_s22  ;;  %p2018_p9 = scmp.lt.s32.totalorder %s2012_s22, %s2012_s22 }
  0x50   :  { %p2019_p10 = por %p2018_p9, %p2017_p8 }
  0x52   :  { %p2020_p11 = pnand %p2019_p10, %p2013_p7 }
  0x54   :  { %2023 = shalt.err (!%p2020_p11)
}
  0x55   :  { %s2087_s5 = smov 256   ;;  %s2088_s17 = smov 16  }
  0x56   :  { %89 = dma.hbm_to_vmem [thread:$0]  %s2465_s9, 1024, %s84_s23, [#allocation10], %s2087_s5, %s2087_s5, %s2088_s17  }
  0x57   :  { %s2089_s30 = smov [#allocation12]   ;;  %s2024_s0 = scalar_lea.hbm %s2466_s10, 2048 }
  0x58   :  { %s95_s16 = sshll.u32 %s2089_s30, 4  ;;  %p2025_p12 = scmp.ne.s32.totalorder %s2466_s10, %s2024_s0  ;;  %s96_s16 = int_to_ptr.vmem [resolvable:$true] %s95_s16 }
  0x59   :  { %p2028_p13 = scmp.lt.u32.totalorder %s2024_s0, %s2466_s10 }
  0x5b   :  { %p2030_p0 = pnand %p2028_p13, %p2025_p12 }
  0x5d   :  { %2033 = shalt.err (!%p2030_p0)
}
  0x5e   :  { %s2034_s26 = scalar_lea.vmem %s96_s16, 2048  ;;  %p2039_p2 = scmp.lt.s32.totalorder %s96_s16, %s96_s16 }
  0x5f   :  { %p2035_p1 = scmp.ne.s32.totalorder %s96_s16, %s2034_s26  ;;  %p2040_p3 = scmp.lt.s32.totalorder %s2034_s26, %s2034_s26 }
  0x61   :  { %p2041_p4 = por %p2040_p3, %p2039_p2 }
  0x63   :  { %p2042_p5 = pnand %p2041_p4, %p2035_p1 }
  0x65   :  { %2045 = shalt.err (!%p2042_p5)
}
  0x66   :  { %101 = dma.hbm_to_vmem [thread:$0]  %s2466_s10, 2048, %s96_s16, [#allocation13], %s2079_s13, %s2079_s13, %s2080_s14  }
  0x67   :  { %2068 = dma.done.wait [#allocation4], 128  }
  0x68   :  { %2069 = vsyncadd [#allocation4], 4294967168 }
  0x69   :  { %2070 = dma.done.wait [#allocation7], 768  }
  0x6a   :  { %2071 = vsyncadd [#allocation7], 4294966528 }
  0x6b   :  { %2072 = dma.done.wait [#allocation10], 3072  }
  0x6c   :  { %2073 = vsyncadd [#allocation10], 4294964224 }
  0x6d   :  { %2074 = dma.done.wait [#allocation13], 2048  }
  0x6e   :  { %2075 = vsyncadd [#allocation13], 4294965248  ;;  %v2090_v0 = vmov 0.0|0.0   ;;  %vm2091_vm0 = vmmov 0   ;;  %v2092_v1 = vmov 0.0   ;;  %v140_v2 = vld [vmem:[#allocation6] sm:$0xff]  ;;  %v328_v63 = vlaneseq }
  0x6f   :  { %1756 = vmatprep.subr.bf16.mxu1 %v2090_v0  ;;  %1707 = vmatprep.mubr.msk.f32.mxu1 %vm2091_vm0, %v2092_v1  ;;  %v141_v3 = vld [vmem:[#allocation6 + $0x8] sm:$0xff]  ;;  %v123_v4 = vld [vmem:[#allocation3] sm:$0xff]  ;;  %v1647_v6 = vld [vmem:[%s2457_s1] ss:$0 sm:$0xff]  ;;  %vm149_vm1 = vcmask 130048   ;;  %vm235_vm2 = vcmask 261120  }
  0x70   :  { %v1757_v5 = vpack.c.bf16 %v141_v3, %v140_v2  ;;  %v1648_v7 = vld [vmem:[%s2458_s2] ss:$0 sm:$0xff]  ;;  %v131_v9 = vsub.f32 %v123_v4, %v1647_v6  ;;  %v225_v10 = vld [vmem:[#allocation8 + $0x8] sm:$0xff]  ;;  %v226_v13 = vld [vmem:[#allocation8 + $0x10] sm:$0xff]  ;;  %v2093_v40 = vmov 0   ;;  %v329_v2 = vshrl.u32 %v328_v63, 7 }
  0x71   :  { %v224_v8 = vld [vmem:[#allocation8] sm:$0xff]  ;;  %v227_v14 = vld [vmem:[#allocation8 + $0x18] sm:$0xff]  ;;  %v311_v16 = vld [vmem:[#allocation9 + $0x8] sm:$0xff]  ;;  %576 = vmatprep.mubr.bf16.mxu0 %v2093_v40  ;;  %s2094_s22 = smov [#allocation14]  }
  0x72   :  { %1758 = vmatpush3.bf16.msra.mxu1 %v1757_v5  ;;  %v1760_v11 = vpack.c.bf16 %v225_v10, %v224_v8  ;;  %v139_v12 = vmul.f32 %v1648_v7, %v131_v9  ;;  %v1763_v15 = vpack.c.bf16 %v227_v14, %v226_v13  ;;  %v315_v17 = vld [vmem:[#allocation9 + $0x28] sm:$0xff]  ;;  %v2261_v19 = vld [vmem:[#allocation11 + $0x4] ss:$16 sps:$4 sm:$0xff]   ;;  %v1649_v20 = vld [vmem:[%s2460_s4] ss:$0 sm:$0xff]  ;;  %v330_v3 = vsub.s32 0, %v329_v2 }
  0x73   :  { %1759 = vmatprep.subr.bf16.mxu1 %v2090_v0  ;;  %v1765_v18 = vpack.c.bf16 %v315_v17, %v311_v16  ;;  %544 = vmatprep.subr.bf16.mxu0 %v2261_v19  ;;  %v310_v21 = vld [vmem:[#allocation9] sm:$0xff]  ;;  %v319_v28 = vld [vmem:[#allocation9 + $0x48] sm:$0xff]  ;;  %v313_v36 = vld [vmem:[#allocation9 + $0x18] sm:$0xff]  ;;  %v334_v5 = vsub.s32 1, %v329_v2  ;;  %v342_v17 = vsub.s32 3, %v329_v2  ;;  %s1635_s5 = sshll.u32 %s2094_s22, 4  ;;  %s1636_s5 = int_to_ptr.vmem [resolvable:$true] %s1635_s5 }
  0x74   :  { %v314_v22 = vld [vmem:[#allocation9 + $0x20] sm:$0xff]  ;;  %v323_v29 = vld [vmem:[#allocation9 + $0x68] sm:$0xff]  ;;  %v317_v37 = vld [vmem:[#allocation9 + $0x38] sm:$0xff]  ;;  %s2046_s17 = scalar_lea.vmem %s1636_s5, 128  ;;  %p2051_p7 = scmp.lt.s32.totalorder %s1636_s5, %s1636_s5 }
  0x75   :  { %1708 = vmatmul.mubr.msk.f32.vlgmr.msra.gmra.mrb[0].mxu1 %vm149_vm1, %v139_v12  ;;  %v1767_v26 = vpack.c.bf16 %v314_v22, %v310_v21  ;;  %v1769_v30 = vpack.c.bf16 %v323_v29, %v319_v28  ;;  %v2269_v31 = vld [vmem:[#allocation11] ss:$16 sps:$4 sm:$0xff]   ;;  %v2272_v35 = vld [vmem:[#allocation11 + $0x24] ss:$16 sps:$4 sm:$0xff]   ;;  %v1773_v38 = vpack.c.bf16 %v317_v37, %v313_v36  ;;  %v321_v45 = vld [vmem:[#allocation9 + $0x58] sm:$0xff]  ;;  %p2047_p6 = scmp.ne.s32.totalorder %s1636_s5, %s2046_s17  ;;  %p2052_p8 = scmp.lt.s32.totalorder %s2046_s17, %s2046_s17 }
  0x76   :  { %1761 = vmatpush3.bf16.msra.mxu1 %v1760_v11  ;;  %1718 = vmatprep.mubr.msk.f32.mxu1 %vm2091_vm0, %v2092_v1  ;;  %v318_v32 = vld [vmem:[#allocation9 + $0x40] sm:$0xff]  ;;  %v312_v42 = vld [vmem:[#allocation9 + $0x10] sm:$0xff]  ;;  %v325_v46 = vld [vmem:[#allocation9 + $0x78] sm:$0xff] }
  0x77   :  { %1762 = vmatprep.subr.bf16.mxu1 %v2090_v0  ;;  %v322_v33 = vld [vmem:[#allocation9 + $0x60] sm:$0xff]  ;;  %545 = vmatpush1.bf16.msra.mxu0 %v2269_v31  ;;  %v316_v43 = vld [vmem:[#allocation9 + $0x30] sm:$0xff]  ;;  %v1777_v51 = vpack.c.bf16 %v325_v46, %v321_v45  ;;  %v2291_v55 = vld [vmem:[#allocation11 + $0xc] ss:$16 sps:$4 sm:$0xff]   ;;  %p2053_p9 = por %p2052_p8, %p2051_p7 }
  0x78   :  { %v1771_v34 = vpack.c.bf16 %v322_v33, %v318_v32  ;;  %v2274_v39 = vld [vmem:[#allocation11 + $0x20] ss:$16 sps:$4 sm:$0xff]   ;;  %546 = vmatprep.subr.bf16.mxu0 %v2272_v35  ;;  %v1775_v49 = vpack.c.bf16 %v316_v43, %v312_v42  ;;  %v2293_v56 = vld [vmem:[#allocation11 + $0x8] ss:$16 sps:$4 sm:$0xff]   ;;  %v2296_v57 = vld [vmem:[#allocation11 + $0x2c] ss:$16 sps:$4 sm:$0xff]  }
  0x79   :  { %v1651_v41 = vld [vmem:[%s2462_s6] ss:$0 sm:$0xff]  ;;  %v320_v52 = vld [vmem:[#allocation9 + $0x50] sm:$0xff]  ;;  %v2300_v58 = vld [vmem:[#allocation11 + $0x28] ss:$16 sps:$4 sm:$0xff]   ;;  %p2054_p10 = pnand %p2053_p9, %p2047_p6 }
  0x7a   :  { %1764 = vmatpush3.bf16.msra.mxu1 %v1763_v15  ;;  %v324_v53 = vld [vmem:[#allocation9 + $0x70] sm:$0xff]  ;;  %v326_v4 = vld [vmem:[%s2464_s8] sm:$0xf] }
  0x7b   :  { %1766 = vmatprep.subr.bf16.mxu1 %v1765_v18  ;;  %547 = vmatpush1.bf16.msra.mxu0 %v2274_v39  ;;  %v1779_v54 = vpack.c.bf16 %v324_v53, %v320_v52  ;;  %v331_v6 = vrot.slane %v326_v4, %v330_v3  ;;  %v335_v7 = vrot.slane %v326_v4, %v334_v5  ;;  %v338_v18 = vsub.s32 2, %v329_v2 }
  0x7c   :  { %653 = vmatprep.subr.bf16.mxu0 %v2261_v19  ;;  %v343_v21 = vrot.slane %v326_v4, %v342_v17 }
  0x7d   :  { %v339_v22 = vrot.slane %v326_v4, %v338_v18 }
  0x7e   :  { %577 = vmatmul.mubr.bf16.vlgmr.msra.gmra.mrb[0].mxu0 %v2093_v40 }
  0x7f   :  { %654 = vmatpush1.bf16.msra.mxu0 %v2269_v31  ;;  %685 = vmatprep.mubr.bf16.mxu0 %v2093_v40 }
  0x80   :  { %655 = vmatprep.subr.bf16.mxu0 %v2272_v35 }
  0x83   :  { %656 = vmatpush1.bf16.msra.mxu0 %v2274_v39 }
  0x84   :  { %780 = vmatprep.subr.bf16.mxu0 %v2261_v19 }
 0x148   :  { %v219_v23 = vpop.f32.mrb[0].mxu1 }
 0x149   :  { %v220_v24 = vadd.f32 %v1649_v20, %v219_v23  ;;  %v1709_v25 = vpop.f32.mrb[1].mxu1 }
 0x14b   :  { %v223_v27 = vmax.f32 %v220_v24, 0.0 }
 0x14d   :  { %1719 = vmatmul.mubr.msk.f32.vlgmr.msra.gmra.mrb[2].mxu1 %vm235_vm2, %v223_v27 }
 0x14e   :  { %1768 = vmatpush1.bf16.msra.mxu1 %v1767_v26  ;;  %415 = vmatprep.mubr.f32.mxu1 %v2092_v1 }
 0x14f   :  { %1770 = vmatprep.subr.bf16.mxu1 %v1769_v30 }
 0x151   :  { %v578_v59 = vpop.f32.mrb[0].mxu0 }
 0x152   :  { %1772 = vmatpush1.bf16.msra.mxu1 %v1771_v34  ;;  %v580_v60 = vpop.f32.mrb[1].mxu0 }
 0x153   :  { %1774 = vmatprep.subr.bf16.mxu1 %v1773_v38  ;;  %v582_v61 = vpop.f32.mrb[2].mxu0 }
 0x154   :  { %v583_v62 = vpop.f32.mrb[3].mxu0 }
 0x220   :  { %v305_v44 = vpop.f32.mrb[2].mxu1 }
 0x221   :  { %v306_v47 = vadd.f32 %v1651_v41, %v305_v44  ;;  %v1720_v48 = vpop.f32.mrb[3].mxu1 }
 0x223   :  { %v309_v50 = vmax.f32 %v306_v47, 0.0 }
 0x225   :  { %1653 = vmatmul.mubr.msk.f32.vlgmr.msra.gmra.mrb[4].mxu1 %vm235_vm2, %v309_v50 }
 0x226   :  { %1776 = vmatpush1.bf16.msra.mxu1 %v1775_v49  ;;  %486 = vmatprep.mubr.f32.mxu1 %v2092_v1 }
 0x227   :  { %1778 = vmatprep.subr.bf16.mxu1 %v1777_v51 }
 0x22a   :  { %1780 = vmatpush1.bf16.msra.mxu1 %v1779_v54 }
 0x22b   :  { %585 = vmatprep.subr.bf16.mxu1 %v2291_v55 }
 0x22d   :  { %1654 = vmatmul.mubr.msk.f32.vlgmr.msra.gmra.mrb[6].mxu1 %vm235_vm2, %v309_v50 }
 0x22e   :  { %586 = vmatpush1.bf16.msra.mxu1 %v2293_v56  ;;  %617 = vmatprep.mubr.bf16.mxu1 %v2093_v40 }
 0x22f   :  { %587 = vmatprep.subr.bf16.mxu1 %v2296_v57 }
 0x232   :  { %588 = vmatpush1.bf16.msra.mxu1 %v2300_v58 }
 0x233   :  { %694 = vmatprep.subr.bf16.mxu1 %v2291_v55 }
 0x235   :  { %618 = vmatmul.mubr.bf16.vlgmr.msra.gmra.mrb[8].mxu1 %v2093_v40 }
 0x236   :  { %695 = vmatpush1.bf16.msra.mxu1 %v2293_v56  ;;  %726 = vmatprep.mubr.bf16.mxu1 %v2093_v40 }
 0x237   :  { %696 = vmatprep.subr.bf16.mxu1 %v2296_v57 }
 0x23a   :  { %697 = vmatpush1.bf16.msra.mxu1 %v2300_v58 }
 0x23b   :  { %821 = vmatprep.subr.bf16.mxu1 %v2291_v55 }
 0x2f8   :  { %v417_v8 = vpop.f32.mrb[4].mxu1 }
 0x2f9   :  { %v2315_v9 = vadd.f32 %v417_v8, %v331_v6  ;;  %v419_v10 = vpop.f32.mrb[5].mxu1 }
 0x2fa   :  { %v2317_v11 = vadd.f32 %v419_v10, %v335_v7 }
 0x2fb   :  { %v626_v12 = vadd.f32 %v578_v59, %v2315_v9 }
 0x2fc   :  { %v627_v13 = vadd.f32 %v580_v60, %v2317_v11 }
 0x2fd   :  { %v630_v15 = vmul.f32 0.5, %v626_v12 }
 0x2fe   :  { %v631_v14 = vmul.f32 0.5, %v627_v13 }
 0x300   :  { %v488_v16 = vpop.f32.mrb[6].mxu1  ;;  %1834 = vtanh.f32 %v631_v14 }
 0x301   :  { %v490_v20 = vpop.f32.mrb[7].mxu1  ;;  %1836 = vtanh.f32 %v630_v15  ;;  %v2323_v25 = vadd.f32 %v488_v16, %v339_v22 }
 0x302   :  { %v2321_v23 = vadd.f32 %v490_v20, %v343_v21 }
 0x308   :  { %v619_v24 = vpop.f32.mrb[8].mxu1 }
 0x309   :  { %v621_v26 = vpop.f32.mrb[9].mxu1  ;;  %v628_v29 = vadd.f32 %v619_v24, %v2323_v25 }
 0x30a   :  { %v629_v27 = vadd.f32 %v621_v26, %v2321_v23  ;;  %v623_v28 = vpop.f32.mrb[10].mxu1  ;;  %v1835_v32 = vpop.eup %1834 }
 0x30b   :  { %v624_v30 = vpop.f32.mrb[11].mxu1  ;;  %v1837_v33 = vpop.eup %1836  ;;  %v637_v34 = vmul.f32 0.5, %v1835_v32  ;;  %v632_v36 = vmul.f32 0.5, %v628_v29 }
 0x30c   :  { %1838 = vtanh.f32 %v629_v27  ;;  %v636_v37 = vmul.f32 0.5, %v1837_v33 }
 0x30d   :  { %v640_v38 = vadd.f32 0.5, %v637_v34  ;;  %1840 = vtanh.f32 %v632_v36 }
 0x30e   :  { %v639_v41 = vadd.f32 0.5, %v636_v37 }
 0x30f   :  { %v643_v43 = vmul.f32 0.0, %v640_v38 }
 0x316   :  { %v1839_v42 = vpop.eup %1838 }
 0x317   :  { %v644_v44 = vmul.f32 %v1839_v42, %v639_v41  ;;  %v1841_v46 = vpop.eup %1840 }
 0x318   :  { %v638_v47 = vmul.f32 0.5, %v1841_v46 }
 0x319   :  { %v645_v45 = vadd.f32 %v644_v44, %v643_v43 }
 0x31a   :  { %v641_v48 = vadd.f32 0.5, %v638_v47 }
 0x31b   :  { %1842 = vtanh.f32 %v645_v45  ;;  %v765_v24 = vrot.slane %v645_v45, 7 }
 0x325   :  { %v1843_v49 = vpop.eup %1842 }
 0x326   :  { %v647_v50 = vmul.f32 %v1843_v49, %v641_v48 }
 0x328   :  { %648 = vst [vmem:[#allocation2] sm:$0x1] %v647_v50  ;;  %v649_v51 = vpack.c.bf16 %v647_v50, %v647_v50 }
 0x32a   :  { %1663 = vmatmul.mubr.msk.bf16.vlgmr.msra.gmra.mrb[4].mxu0 %vm235_vm2, %v649_v51  ;;  %1664 = vmatmul.mubr.msk.bf16.vlgmr.msra.gmra.mrb[12].mxu1 %vm235_vm2, %v649_v51 }
 0x32b   :  { %781 = vmatpush1.bf16.msra.mxu0 %v2269_v31  ;;  %822 = vmatpush1.bf16.msra.mxu1 %v2293_v56 }
 0x32c   :  { %782 = vmatprep.subr.bf16.mxu0 %v2272_v35  ;;  %823 = vmatprep.subr.bf16.mxu1 %v2296_v57 }
 0x32d   :  { %812 = vmatprep.mubr.bf16.mxu0 %v2093_v40  ;;  %853 = vmatprep.mubr.bf16.mxu1 %v2093_v40 }
 0x32f   :  { %783 = vmatpush1.bf16.msra.mxu0 %v2274_v39  ;;  %824 = vmatpush1.bf16.msra.mxu1 %v2300_v58 }
 0x330   :  { %906 = vmatprep.subr.bf16.mxu0 %v2261_v19  ;;  %947 = vmatprep.subr.bf16.mxu1 %v2291_v55 }
 0x3fd   :  { %v687_v52 = vpop.f32.mrb[4].mxu0  ;;  %v728_v53 = vpop.f32.mrb[12].mxu1 }
 0x3fe   :  { %v739_v54 = vrot.slane %v687_v52, 7  ;;  %v689_v59 = vpop.f32.mrb[5].mxu0  ;;  %v730_v60 = vpop.f32.mrb[13].mxu1  ;;  %v741_v12 = vrot.slane %v728_v53, 7 }
 0x3ff   :  { %v740_v61 = vrot.slane %v689_v59, 7  ;;  %v691_v62 = vpop.f32.mrb[6].mxu0  ;;  %v732_v63 = vpop.f32.mrb[14].mxu1  ;;  %v742_v3 = vrot.slane %v730_v60, 7 }
 0x400   :  { %v747_v2 = vadd.f32 %v739_v54, %v2315_v9  ;;  %v692_v4 = vpop.f32.mrb[7].mxu0  ;;  %v733_v5 = vpop.f32.mrb[15].mxu1  ;;  %v749_v13 = vadd.f32 %v741_v12, %v2323_v25 }
 0x401   :  { %v748_v6 = vadd.f32 %v740_v61, %v2317_v11  ;;  %v750_v10 = vadd.f32 %v742_v3, %v2321_v23 }
 0x402   :  { %v751_v7 = vmul.f32 0.5, %v747_v2  ;;  %v753_v14 = vmul.f32 0.5, %v749_v13 }
 0x403   :  { %v752_v8 = vmul.f32 0.5, %v748_v6 }
 0x404   :  { %1844 = vtanh.f32 %v751_v7 }
 0x405   :  { %1846 = vtanh.f32 %v752_v8 }
 0x406   :  { %1848 = vtanh.f32 %v750_v10 }
 0x407   :  { %1850 = vtanh.f32 %v753_v14 }
 0x40e   :  { %v1845_v15 = vpop.eup %1844 }
 0x40f   :  { %v757_v16 = vmul.f32 0.5, %v1845_v15  ;;  %v1847_v17 = vpop.eup %1846 }
 0x410   :  { %v758_v20 = vmul.f32 0.5, %v1847_v17  ;;  %v1849_v21 = vpop.eup %1848 }
 0x411   :  { %v760_v18 = vadd.f32 0.5, %v757_v16  ;;  %v1851_v29 = vpop.eup %1850 }
 0x412   :  { %v761_v22 = vadd.f32 0.5, %v758_v20  ;;  %v759_v30 = vmul.f32 0.5, %v1851_v29 }
 0x413   :  { %v768_v26 = vmul.f32 %v1849_v21, %v760_v18 }
 0x414   :  { %v767_v27 = vmul.f32 %v765_v24, %v761_v22  ;;  %v762_v32 = vadd.f32 0.5, %v759_v30 }
 0x416   :  { %v769_v28 = vadd.f32 %v768_v26, %v767_v27 }
 0x418   :  { %1852 = vtanh.f32 %v769_v28  ;;  %v892_v8 = vrot.slane %v769_v28, 7 }
 0x422   :  { %v1853_v33 = vpop.eup %1852 }
 0x423   :  { %v771_v34 = vmul.f32 %v1853_v33, %v762_v32 }
 0x425   :  { %772 = vst [vmem:[#allocation2] sm:$0x2] %v771_v34  ;;  %v773_v36 = vpack.c.bf16 %v771_v34, %v771_v34 }
 0x427   :  { %v775_v37 = vshrl.u32 %v773_v36, 16 }
 0x429   :  { %1665 = vmatmul.mubr.msk.bf16.vlgmr.msra.gmra.mrb[8].mxu0 %vm235_vm2, %v775_v37  ;;  %1666 = vmatmul.mubr.msk.bf16.vlgmr.msra.gmra.mrb[16].mxu1 %vm235_vm2, %v775_v37 }
 0x42a   :  { %907 = vmatpush1.bf16.msra.mxu0 %v2269_v31  ;;  %948 = vmatpush1.bf16.msra.mxu1 %v2293_v56 }
 0x42b   :  { %908 = vmatprep.subr.bf16.mxu0 %v2272_v35  ;;  %949 = vmatprep.subr.bf16.mxu1 %v2296_v57 }
 0x42c   :  { %938 = vmatprep.mubr.bf16.mxu0 %v2093_v40  ;;  %979 = vmatprep.mubr.bf16.mxu1 %v2093_v40 }
 0x42e   :  { %909 = vmatpush1.bf16.msra.mxu0 %v2274_v39  ;;  %950 = vmatpush1.bf16.msra.mxu1 %v2300_v58 }
 0x42f   :  { %1034 = vmatprep.subr.bf16.mxu0 %v2261_v19  ;;  %1075 = vmatprep.subr.bf16.mxu1 %v2291_v55 }
 0x4fc   :  { %v814_v38 = vpop.f32.mrb[8].mxu0  ;;  %v855_v41 = vpop.f32.mrb[16].mxu1 }
 0x4fd   :  { %v866_v42 = vrot.slane %v814_v38, 6  ;;  %v816_v43 = vpop.f32.mrb[9].mxu0  ;;  %v857_v44 = vpop.f32.mrb[17].mxu1  ;;  %v868_v60 = vrot.slane %v855_v41, 6 }
 0x4fe   :  { %v867_v45 = vrot.slane %v816_v43, 6  ;;  %v818_v46 = vpop.f32.mrb[10].mxu0  ;;  %v859_v47 = vpop.f32.mrb[18].mxu1  ;;  %v869_v49 = vrot.slane %v857_v44, 6 }
 0x4ff   :  { %v874_v48 = vadd.f32 %v866_v42, %v2315_v9  ;;  %v819_v50 = vpop.f32.mrb[11].mxu0  ;;  %v860_v51 = vpop.f32.mrb[19].mxu1  ;;  %v876_v61 = vadd.f32 %v868_v60, %v2323_v25 }
 0x500   :  { %v875_v52 = vadd.f32 %v867_v45, %v2317_v11  ;;  %v877_v59 = vadd.f32 %v869_v49, %v2321_v23 }
 0x501   :  { %v878_v53 = vmul.f32 0.5, %v874_v48  ;;  %v880_v62 = vmul.f32 0.5, %v876_v61 }
 0x502   :  { %v879_v54 = vmul.f32 0.5, %v875_v52 }
 0x503   :  { %1854 = vtanh.f32 %v878_v53 }
 0x504   :  { %1856 = vtanh.f32 %v879_v54 }
 0x505   :  { %1858 = vtanh.f32 %v877_v59 }
 0x506   :  { %1860 = vtanh.f32 %v880_v62 }
 0x50d   :  { %v1855_v63 = vpop.eup %1854 }
 0x50e   :  { %v884_v2 = vmul.f32 0.5, %v1855_v63  ;;  %v1857_v3 = vpop.eup %1856 }
 0x50f   :  { %v885_v5 = vmul.f32 0.5, %v1857_v3  ;;  %v1859_v6 = vpop.eup %1858 }
 0x510   :  { %v887_v4 = vadd.f32 0.5, %v884_v2  ;;  %v1861_v14 = vpop.eup %1860 }
 0x511   :  { %v888_v7 = vadd.f32 0.5, %v885_v5  ;;  %v886_v15 = vmul.f32 0.5, %v1861_v14 }
 0x512   :  { %v895_v10 = vmul.f32 %v1859_v6, %v887_v4 }
 0x513   :  { %v894_v12 = vmul.f32 %v892_v8, %v888_v7  ;;  %v889_v16 = vadd.f32 0.5, %v886_v15 }
 0x515   :  { %v896_v13 = vadd.f32 %v895_v10, %v894_v12 }
 0x517   :  { %1862 = vtanh.f32 %v896_v13  ;;  %v1018_v54 = vrot.slane %v896_v13, 7 }
 0x521   :  { %v1863_v17 = vpop.eup %1862 }
 0x522   :  { %v898_v18 = vmul.f32 %v1863_v17, %v889_v16 }
 0x524   :  { %899 = vst [vmem:[#allocation2] sm:$0x4] %v898_v18  ;;  %v900_v20 = vpack.c.bf16 %v898_v18, %v898_v18 }
 0x526   :  { %v902_v21 = vrot.slane %v900_v20, 1 }
 0x528   :  { %1667 = vmatmul.mubr.msk.bf16.vlgmr.msra.gmra.mrb[12].mxu0 %vm235_vm2, %v902_v21  ;;  %1668 = vmatmul.mubr.msk.bf16.vlgmr.msra.gmra.mrb[20].mxu1 %vm235_vm2, %v902_v21 }
 0x529   :  { %1035 = vmatpush1.bf16.msra.mxu0 %v2269_v31  ;;  %1076 = vmatpush1.bf16.msra.mxu1 %v2293_v56 }
 0x52a   :  { %1036 = vmatprep.subr.bf16.mxu0 %v2272_v35  ;;  %1077 = vmatprep.subr.bf16.mxu1 %v2296_v57 }
 0x52b   :  { %1066 = vmatprep.mubr.bf16.mxu0 %v2093_v40  ;;  %1107 = vmatprep.mubr.bf16.mxu1 %v2093_v40 }
 0x52d   :  { %1037 = vmatpush1.bf16.msra.mxu0 %v2274_v39  ;;  %1078 = vmatpush1.bf16.msra.mxu1 %v2300_v58 }
 0x52e   :  { %1160 = vmatprep.subr.bf16.mxu0 %v2261_v19  ;;  %1201 = vmatprep.subr.bf16.mxu1 %v2291_v55 }
 0x5fb   :  { %v940_v22 = vpop.f32.mrb[12].mxu0  ;;  %v981_v24 = vpop.f32.mrb[20].mxu1 }
 0x5fc   :  { %v992_v26 = vrot.slane %v940_v22, 5  ;;  %v942_v27 = vpop.f32.mrb[13].mxu0  ;;  %v983_v28 = vpop.f32.mrb[21].mxu1  ;;  %v994_v44 = vrot.slane %v981_v24, 5 }
 0x5fd   :  { %v993_v29 = vrot.slane %v942_v27, 5  ;;  %v944_v30 = vpop.f32.mrb[14].mxu0  ;;  %v985_v32 = vpop.f32.mrb[22].mxu1  ;;  %v995_v34 = vrot.slane %v983_v28, 5 }
 0x5fe   :  { %v1000_v33 = vadd.f32 %v992_v26, %v2315_v9  ;;  %v945_v36 = vpop.f32.mrb[15].mxu0  ;;  %v986_v37 = vpop.f32.mrb[23].mxu1  ;;  %v1002_v45 = vadd.f32 %v994_v44, %v2323_v25 }
 0x5ff   :  { %v1001_v38 = vadd.f32 %v993_v29, %v2317_v11  ;;  %v1003_v43 = vadd.f32 %v995_v34, %v2321_v23 }
 0x600   :  { %v1004_v41 = vmul.f32 0.5, %v1000_v33  ;;  %v1006_v46 = vmul.f32 0.5, %v1002_v45 }
 0x601   :  { %v1005_v42 = vmul.f32 0.5, %v1001_v38 }
 0x602   :  { %1864 = vtanh.f32 %v1004_v41 }
 0x603   :  { %1866 = vtanh.f32 %v1005_v42 }
 0x604   :  { %1868 = vtanh.f32 %v1003_v43 }
 0x605   :  { %1870 = vtanh.f32 %v1006_v46 }
 0x60c   :  { %v1865_v47 = vpop.eup %1864 }
 0x60d   :  { %v1010_v48 = vmul.f32 0.5, %v1865_v47  ;;  %v1867_v49 = vpop.eup %1866 }
 0x60e   :  { %v1011_v51 = vmul.f32 0.5, %v1867_v49  ;;  %v1869_v52 = vpop.eup %1868 }
 0x60f   :  { %v1013_v50 = vadd.f32 0.5, %v1010_v48  ;;  %v1871_v62 = vpop.eup %1870 }
 0x610   :  { %v1014_v53 = vadd.f32 0.5, %v1011_v51  ;;  %v1012_v63 = vmul.f32 0.5, %v1871_v62 }
 0x611   :  { %v1021_v59 = vmul.f32 %v1869_v52, %v1013_v50 }
 0x612   :  { %v1020_v60 = vmul.f32 %v1018_v54, %v1014_v53  ;;  %v1015_v2 = vadd.f32 0.5, %v1012_v63 }
 0x614   :  { %v1022_v61 = vadd.f32 %v1021_v59, %v1020_v60 }
 0x616   :  { %1872 = vtanh.f32 %v1022_v61  ;;  %v1146_v43 = vrot.slane %v1022_v61, 7 }
 0x620   :  { %v1873_v3 = vpop.eup %1872 }
 0x621   :  { %v1024_v4 = vmul.f32 %v1873_v3, %v1015_v2 }
 0x623   :  { %1025 = vst [vmem:[#allocation2] sm:$0x8] %v1024_v4  ;;  %v1026_v5 = vpack.c.bf16 %v1024_v4, %v1024_v4 }
 0x625   :  { %v1028_v6 = vshrl.u32 %v1026_v5, 16 }
 0x627   :  { %v1030_v7 = vrot.slane %v1028_v6, 1 }
 0x629   :  { %1669 = vmatmul.mubr.msk.bf16.vlgmr.msra.gmra.mrb[16].mxu0 %vm235_vm2, %v1030_v7  ;;  %1670 = vmatmul.mubr.msk.bf16.vlgmr.msra.gmra.mrb[24].mxu1 %vm235_vm2, %v1030_v7 }
 0x62a   :  { %1161 = vmatpush1.bf16.msra.mxu0 %v2269_v31  ;;  %1202 = vmatpush1.bf16.msra.mxu1 %v2293_v56 }
 0x62b   :  { %1162 = vmatprep.subr.bf16.mxu0 %v2272_v35  ;;  %1203 = vmatprep.subr.bf16.mxu1 %v2296_v57 }
 0x62c   :  { %1192 = vmatprep.mubr.bf16.mxu0 %v2093_v40  ;;  %1233 = vmatprep.mubr.bf16.mxu1 %v2093_v40 }
 0x62e   :  { %1163 = vmatpush1.bf16.msra.mxu0 %v2274_v39  ;;  %1204 = vmatpush1.bf16.msra.mxu1 %v2300_v58 }
 0x62f   :  { %1288 = vmatprep.subr.bf16.mxu0 %v2261_v19  ;;  %1329 = vmatprep.subr.bf16.mxu1 %v2291_v55 }
 0x6fc   :  { %v1068_v8 = vpop.f32.mrb[16].mxu0  ;;  %v1109_v10 = vpop.f32.mrb[24].mxu1 }
 0x6fd   :  { %v1120_v12 = vrot.slane %v1068_v8, 4  ;;  %v1070_v13 = vpop.f32.mrb[17].mxu0  ;;  %v1111_v14 = vpop.f32.mrb[25].mxu1  ;;  %v1122_v29 = vrot.slane %v1109_v10, 4 }
 0x6fe   :  { %v1121_v15 = vrot.slane %v1070_v13, 4  ;;  %v1072_v16 = vpop.f32.mrb[18].mxu0  ;;  %v1113_v17 = vpop.f32.mrb[26].mxu1  ;;  %v1123_v20 = vrot.slane %v1111_v14, 4 }
 0x6ff   :  { %v1128_v18 = vadd.f32 %v1120_v12, %v2315_v9  ;;  %v1073_v21 = vpop.f32.mrb[19].mxu0  ;;  %v1114_v22 = vpop.f32.mrb[27].mxu1  ;;  %v1130_v30 = vadd.f32 %v1122_v29, %v2323_v25 }
 0x700   :  { %v1129_v24 = vadd.f32 %v1121_v15, %v2317_v11  ;;  %v1131_v28 = vadd.f32 %v1123_v20, %v2321_v23 }
 0x701   :  { %v1132_v26 = vmul.f32 0.5, %v1128_v18  ;;  %v1134_v32 = vmul.f32 0.5, %v1130_v30 }
 0x702   :  { %v1133_v27 = vmul.f32 0.5, %v1129_v24 }
 0x703   :  { %1874 = vtanh.f32 %v1132_v26 }
 0x704   :  { %1876 = vtanh.f32 %v1133_v27 }
 0x705   :  { %1878 = vtanh.f32 %v1131_v28 }
 0x706   :  { %1880 = vtanh.f32 %v1134_v32 }
 0x70d   :  { %v1875_v33 = vpop.eup %1874 }
 0x70e   :  { %v1138_v34 = vmul.f32 0.5, %v1875_v33  ;;  %v1877_v36 = vpop.eup %1876 }
 0x70f   :  { %v1139_v38 = vmul.f32 0.5, %v1877_v36  ;;  %v1879_v41 = vpop.eup %1878 }
 0x710   :  { %v1141_v37 = vadd.f32 0.5, %v1138_v34  ;;  %v1881_v47 = vpop.eup %1880 }
 0x711   :  { %v1142_v42 = vadd.f32 0.5, %v1139_v38  ;;  %v1140_v48 = vmul.f32 0.5, %v1881_v47 }
 0x712   :  { %v1149_v44 = vmul.f32 %v1879_v41, %v1141_v37 }
 0x713   :  { %v1148_v45 = vmul.f32 %v1146_v43, %v1142_v42  ;;  %v1143_v49 = vadd.f32 0.5, %v1140_v48 }
 0x715   :  { %v1150_v46 = vadd.f32 %v1149_v44, %v1148_v45 }
 0x717   :  { %1882 = vtanh.f32 %v1150_v46  ;;  %v1272_v24 = vrot.slane %v1150_v46, 7 }
 0x721   :  { %v1883_v50 = vpop.eup %1882 }
 0x722   :  { %v1152_v51 = vmul.f32 %v1883_v50, %v1143_v49 }
 0x724   :  { %1153 = vst [vmem:[#allocation2] sm:$0x10] %v1152_v51  ;;  %v1154_v52 = vpack.c.bf16 %v1152_v51, %v1152_v51 }
 0x726   :  { %v1156_v53 = vrot.slane %v1154_v52, 2 }
 0x728   :  { %1671 = vmatmul.mubr.msk.bf16.vlgmr.msra.gmra.mrb[20].mxu0 %vm235_vm2, %v1156_v53  ;;  %1672 = vmatmul.mubr.msk.bf16.vlgmr.msra.gmra.mrb[28].mxu1 %vm235_vm2, %v1156_v53 }
 0x729   :  { %1289 = vmatpush1.bf16.msra.mxu0 %v2269_v31  ;;  %1330 = vmatpush1.bf16.msra.mxu1 %v2293_v56 }
 0x72a   :  { %1290 = vmatprep.subr.bf16.mxu0 %v2272_v35  ;;  %1331 = vmatprep.subr.bf16.mxu1 %v2296_v57 }
 0x72b   :  { %1320 = vmatprep.mubr.bf16.mxu0 %v2093_v40  ;;  %1361 = vmatprep.mubr.bf16.mxu1 %v2093_v40 }
 0x72d   :  { %1291 = vmatpush1.bf16.msra.mxu0 %v2274_v39  ;;  %1332 = vmatpush1.bf16.msra.mxu1 %v2300_v58 }
 0x72e   :  { %1414 = vmatprep.subr.bf16.mxu0 %v2261_v19  ;;  %1455 = vmatprep.subr.bf16.mxu1 %v2291_v55 }
 0x7fb   :  { %v1194_v54 = vpop.f32.mrb[20].mxu0  ;;  %v1235_v59 = vpop.f32.mrb[28].mxu1 }
 0x7fc   :  { %v1246_v60 = vrot.slane %v1194_v54, 3  ;;  %v1196_v61 = vpop.f32.mrb[21].mxu0  ;;  %v1237_v62 = vpop.f32.mrb[29].mxu1  ;;  %v1248_v55 = vrot.slane %v1235_v59, 3 }
 0x7fd   :  { %v1247_v63 = vrot.slane %v1196_v61, 3  ;;  %v1198_v2 = vpop.f32.mrb[22].mxu0  ;;  %v1239_v3 = vpop.f32.mrb[30].mxu1  ;;  %v1249_v5 = vrot.slane %v1237_v62, 3 }
 0x7fe   :  { %v1254_v4 = vadd.f32 %v1246_v60, %v2315_v9  ;;  %v1199_v6 = vpop.f32.mrb[23].mxu0  ;;  %v1240_v7 = vpop.f32.mrb[31].mxu1  ;;  %v1256_v13 = vadd.f32 %v1248_v55, %v2323_v25 }
 0x7ff   :  { %v1255_v8 = vadd.f32 %v1247_v63, %v2317_v11  ;;  %v1257_v19 = vadd.f32 %v1249_v5, %v2321_v23 }
 0x800   :  { %v1258_v10 = vmul.f32 0.5, %v1254_v4  ;;  %v1260_v14 = vmul.f32 0.5, %v1256_v13  ;;  %v1535_v13 = vld [vmem:[#allocation12] sm:$0xff] }
 0x801   :  { %v1259_v12 = vmul.f32 0.5, %v1255_v8 }
 0x802   :  { %1884 = vtanh.f32 %v1258_v10 }
 0x803   :  { %1886 = vtanh.f32 %v1259_v12 }
 0x804   :  { %1888 = vtanh.f32 %v1257_v19 }
 0x805   :  { %1890 = vtanh.f32 %v1260_v14  ;;  %v1536_v14 = vld [vmem:[#allocation12 + $0x8] sm:$0xff] }
 0x80c   :  { %v1885_v15 = vpop.eup %1884 }
 0x80d   :  { %v1264_v16 = vmul.f32 0.5, %v1885_v15  ;;  %v1887_v17 = vpop.eup %1886  ;;  %v1782_v15 = vpack.c.bf16 %v1536_v14, %v1535_v13 }
 0x80e   :  { %v1265_v20 = vmul.f32 0.5, %v1887_v17  ;;  %v1889_v21 = vpop.eup %1888  ;;  %v1538_v17 = vld [vmem:[#allocation12 + $0x18] sm:$0xff] }
 0x80f   :  { %v1267_v18 = vadd.f32 0.5, %v1264_v16  ;;  %v1891_v29 = vpop.eup %1890  ;;  %v1537_v16 = vld [vmem:[#allocation12 + $0x10] sm:$0xff] }
 0x810   :  { %v1268_v22 = vadd.f32 0.5, %v1265_v20  ;;  %v1266_v30 = vmul.f32 0.5, %v1891_v29  ;;  %v1539_v20 = vld [vmem:[#allocation12 + $0x20] sm:$0xff] }
 0x811   :  { %v1275_v26 = vmul.f32 %v1889_v21, %v1267_v18  ;;  %v1785_v18 = vpack.c.bf16 %v1538_v17, %v1537_v16  ;;  %v1540_v21 = vld [vmem:[#allocation12 + $0x28] sm:$0xff] }
 0x812   :  { %v1274_v27 = vmul.f32 %v1272_v24, %v1268_v22  ;;  %v1269_v32 = vadd.f32 0.5, %v1266_v30  ;;  %v1788_v22 = vpack.c.bf16 %v1540_v21, %v1539_v20  ;;  %v1541_v24 = vld [vmem:[#allocation12 + $0x30] sm:$0xff] }
 0x813   :  { %v1545_v30 = vld [vmem:[#allocation12 + $0x50] sm:$0xff] }
 0x814   :  { %v1276_v28 = vadd.f32 %v1275_v26, %v1274_v27  ;;  %v1543_v27 = vld [vmem:[#allocation12 + $0x40] sm:$0xff] }
 0x816   :  { %1892 = vtanh.f32 %v1276_v28  ;;  %v1400_v2 = vrot.slane %v1276_v28, 7  ;;  %v1544_v28 = vld [vmem:[#allocation12 + $0x48] sm:$0xff] }
 0x817   :  { %v1794_v29 = vpack.c.bf16 %v1544_v28, %v1543_v27 }
 0x820   :  { %v1893_v33 = vpop.eup %1892 }
 0x821   :  { %v1278_v34 = vmul.f32 %v1893_v33, %v1269_v32  ;;  %v1546_v32 = vld [vmem:[#allocation12 + $0x58] sm:$0xff] }
 0x822   :  { %v1797_v33 = vpack.c.bf16 %v1546_v32, %v1545_v30 }
 0x823   :  { %1279 = vst [vmem:[#allocation2] sm:$0x20] %v1278_v34  ;;  %v1280_v36 = vpack.c.bf16 %v1278_v34, %v1278_v34  ;;  %v1547_v34 = vld [vmem:[#allocation12 + $0x60] sm:$0xff] }
 0x825   :  { %v1282_v37 = vshrl.u32 %v1280_v36, 16  ;;  %v1548_v36 = vld [vmem:[#allocation12 + $0x68] sm:$0xff] }
 0x827   :  { %v1284_v38 = vrot.slane %v1282_v37, 2  ;;  %v1800_v37 = vpack.c.bf16 %v1548_v36, %v1547_v34 }
 0x829   :  { %1673 = vmatmul.mubr.msk.bf16.vlgmr.msra.gmra.mrb[24].mxu0 %vm235_vm2, %v1284_v38  ;;  %1674 = vmatmul.mubr.msk.bf16.vlgmr.msra.gmra.mrb[32].mxu1 %vm235_vm2, %v1284_v38  ;;  %v1549_v38 = vld [vmem:[#allocation12 + $0x70] sm:$0xff] }
 0x82a   :  { %1415 = vmatpush1.bf16.msra.mxu0 %v2269_v31  ;;  %1456 = vmatpush1.bf16.msra.mxu1 %v2293_v56 }
 0x82b   :  { %1416 = vmatprep.subr.bf16.mxu0 %v2272_v35  ;;  %1457 = vmatprep.subr.bf16.mxu1 %v2296_v57 }
 0x82c   :  { %1446 = vmatprep.mubr.bf16.mxu0 %v2093_v40  ;;  %1487 = vmatprep.mubr.bf16.mxu1 %v2093_v40 }
 0x82e   :  { %1417 = vmatpush1.bf16.msra.mxu0 %v2274_v39  ;;  %1458 = vmatpush1.bf16.msra.mxu1 %v2300_v58 }
 0x82f   :  { %1781 = vmatprep.subr.bf16.mxu0 %v2090_v0 }
 0x8fc   :  { %v1322_v41 = vpop.f32.mrb[24].mxu0  ;;  %v1363_v42 = vpop.f32.mrb[32].mxu1 }
 0x8fd   :  { %v1374_v43 = vrot.slane %v1322_v41, 2  ;;  %v1324_v31 = vpop.f32.mrb[25].mxu0  ;;  %v1365_v44 = vpop.f32.mrb[33].mxu1  ;;  %v1376_v50 = vrot.slane %v1363_v42, 2  ;;  %v1550_v41 = vld [vmem:[#allocation12 + $0x78] sm:$0xff] }
 0x8fe   :  { %v1375_v56 = vrot.slane %v1324_v31, 2  ;;  %v1326_v45 = vpop.f32.mrb[26].mxu0  ;;  %v1367_v35 = vpop.f32.mrb[34].mxu1  ;;  %v1377_v46 = vrot.slane %v1365_v44, 2  ;;  %v1803_v42 = vpack.c.bf16 %v1550_v41, %v1549_v38 }
 0x8ff   :  { %v1382_v57 = vadd.f32 %v1374_v43, %v2315_v9  ;;  %v1327_v47 = vpop.f32.mrb[27].mxu0  ;;  %v1368_v48 = vpop.f32.mrb[35].mxu1  ;;  %v1384_v51 = vadd.f32 %v1376_v50, %v2323_v25 }
 0x900   :  { %v1383_v40 = vadd.f32 %v1375_v56, %v2317_v11  ;;  %v1385_v58 = vadd.f32 %v1377_v46, %v2321_v23 }
 0x901   :  { %v1386_v39 = vmul.f32 0.5, %v1382_v57  ;;  %v1388_v52 = vmul.f32 0.5, %v1384_v51 }
 0x902   :  { %v1387_v49 = vmul.f32 0.5, %v1383_v40 }
 0x903   :  { %1894 = vtanh.f32 %v1386_v39 }
 0x904   :  { %1896 = vtanh.f32 %v1387_v49 }
 0x905   :  { %1898 = vtanh.f32 %v1385_v58 }
 0x906   :  { %1900 = vtanh.f32 %v1388_v52 }
 0x90d   :  { %v1895_v53 = vpop.eup %1894 }
 0x90e   :  { %v1392_v54 = vmul.f32 0.5, %v1895_v53  ;;  %v1897_v59 = vpop.eup %1896 }
 0x90f   :  { %v1393_v61 = vmul.f32 0.5, %v1897_v59  ;;  %v1899_v62 = vpop.eup %1898 }
 0x910   :  { %v1395_v60 = vadd.f32 0.5, %v1392_v54  ;;  %v1901_v6 = vpop.eup %1900 }
 0x911   :  { %v1396_v63 = vadd.f32 0.5, %v1393_v61  ;;  %v1394_v7 = vmul.f32 0.5, %v1901_v6 }
 0x912   :  { %v1403_v3 = vmul.f32 %v1899_v62, %v1395_v60 }
 0x913   :  { %v1402_v4 = vmul.f32 %v1400_v2, %v1396_v63  ;;  %v1397_v8 = vadd.f32 0.5, %v1394_v7 }
 0x915   :  { %v2422_v5 = vadd.f32 %v1403_v3, %v1402_v4 }
 0x917   :  { %1902 = vtanh.f32 %v2422_v5 }
 0x921   :  { %v1903_v10 = vpop.eup %1902 }
 0x922   :  { %v1406_v12 = vmul.f32 %v1903_v10, %v1397_v8 }
 0x924   :  { %1407 = vst [vmem:[#allocation2] sm:$0x40] %v1406_v12  ;;  %v1408_v19 = vpack.c.bf16 %v1406_v12, %v1406_v12  ;;  %v1677_v12 = vld [vmem:[%s2467_s11] ss:$0 sm:$0xff] }
 0x926   :  { %v1410_v55 = vrot.slane %v1408_v19, 3 }
 0x928   :  { %1675 = vmatmul.mubr.msk.bf16.vlgmr.msra.gmra.mrb[28].mxu0 %vm235_vm2, %v1410_v55  ;;  %1676 = vmatmul.mubr.msk.bf16.vlgmr.msra.gmra.mrb[36].mxu1 %vm235_vm2, %v1410_v55 }
 0x929   :  { %1753 = vmatprep.mubr.msk.f32.mxu0 %vm2091_vm0, %v2092_v1  ;;  %1783 = vmatpush3.bf16.msra.mxu0 %v1782_v15  ;;  %v1542_v1 = vld [vmem:[#allocation12 + $0x38] sm:$0xff] }
 0x92a   :  { %1784 = vmatprep.subr.bf16.mxu0 %v2090_v0  ;;  %v1791_v26 = vpack.c.bf16 %v1542_v1, %v1541_v24 }
 0x92d   :  { %1786 = vmatpush3.bf16.msra.mxu0 %v1785_v18 }
 0x92e   :  { %1787 = vmatprep.subr.bf16.mxu0 %v2090_v0 }
 0x931   :  { %1789 = vmatpush3.bf16.msra.mxu0 %v1788_v22 }
 0x932   :  { %1790 = vmatprep.subr.bf16.mxu0 %v2090_v0 }
 0x935   :  { %1792 = vmatpush3.bf16.msra.mxu0 %v1791_v26 }
 0x936   :  { %1793 = vmatprep.subr.bf16.mxu0 %v2090_v0 }
 0x939   :  { %1795 = vmatpush3.bf16.msra.mxu0 %v1794_v29 }
 0x93a   :  { %1796 = vmatprep.subr.bf16.mxu0 %v2090_v0 }
 0x93d   :  { %1798 = vmatpush3.bf16.msra.mxu0 %v1797_v33 }
 0x93e   :  { %1799 = vmatprep.subr.bf16.mxu0 %v2090_v0 }
 0x941   :  { %1801 = vmatpush3.bf16.msra.mxu0 %v1800_v37 }
 0x942   :  { %1802 = vmatprep.subr.bf16.mxu0 %v2090_v0 }
 0x945   :  { %1804 = vmatpush3.bf16.msra.mxu0 %v1803_v42 }
 0x9fb   :  { %v1448_v43 = vpop.f32.mrb[28].mxu0  ;;  %v1489_v31 = vpop.f32.mrb[36].mxu1 }
 0x9fc   :  { %v1500_v44 = vrot.slane %v1448_v43, 1  ;;  %v1450_v56 = vpop.f32.mrb[29].mxu0  ;;  %v1491_v45 = vpop.f32.mrb[37].mxu1  ;;  %v1502_v51 = vrot.slane %v1489_v31, 1 }
 0x9fd   :  { %v1501_v35 = vrot.slane %v1450_v56, 1  ;;  %v1452_v57 = vpop.f32.mrb[30].mxu0  ;;  %v1493_v46 = vpop.f32.mrb[38].mxu1  ;;  %v1503_v48 = vrot.slane %v1491_v45, 1 }
 0x9fe   :  { %v1508_v47 = vadd.f32 %v1500_v44, %v2315_v9  ;;  %v1453_v40 = vpop.f32.mrb[31].mxu0  ;;  %v1494_v39 = vpop.f32.mrb[39].mxu1  ;;  %v1510_v52 = vadd.f32 %v1502_v51, %v2323_v25 }
 0x9ff   :  { %v1509_v49 = vadd.f32 %v1501_v35, %v2317_v11  ;;  %v1511_v0 = vadd.f32 %v1503_v48, %v2321_v23  ;;  %v1526_v11 = vrot.slane %v2422_v5, 7 }
 0xa00   :  { %v1512_v58 = vmul.f32 0.5, %v1508_v47  ;;  %v1514_v53 = vmul.f32 0.5, %v1510_v52 }
 0xa01   :  { %v1513_v50 = vmul.f32 0.5, %v1509_v49 }
 0xa02   :  { %1904 = vtanh.f32 %v1512_v58 }
 0xa03   :  { %1906 = vtanh.f32 %v1513_v50 }
 0xa04   :  { %1908 = vtanh.f32 %v1511_v0 }
 0xa05   :  { %1910 = vtanh.f32 %v1514_v53 }
 0xa0c   :  { %v1905_v54 = vpop.eup %1904 }
 0xa0d   :  { %v1518_v59 = vmul.f32 0.5, %v1905_v54  ;;  %v1907_v60 = vpop.eup %1906 }
 0xa0e   :  { %v1519_v61 = vmul.f32 0.5, %v1907_v60  ;;  %v1909_v62 = vpop.eup %1908 }
 0xa0f   :  { %v1521_v9 = vadd.f32 0.5, %v1518_v59  ;;  %v1911_v23 = vpop.eup %1910 }
 0xa10   :  { %v1522_v63 = vadd.f32 0.5, %v1519_v61  ;;  %v1520_v6 = vmul.f32 0.5, %v1911_v23 }
 0xa11   :  { %v1529_v2 = vmul.f32 %v1909_v62, %v1521_v9 }
 0xa12   :  { %v1528_v3 = vmul.f32 %v1526_v11, %v1522_v63  ;;  %v1523_v7 = vadd.f32 0.5, %v1520_v6 }
 0xa14   :  { %v1530_v4 = vadd.f32 %v1529_v2, %v1528_v3 }
 0xa16   :  { %1912 = vtanh.f32 %v1530_v4 }
 0xa20   :  { %v1913_v8 = vpop.eup %1912 }
 0xa21   :  { %v1532_v25 = vmul.f32 %v1913_v8, %v1523_v7 }
 0xa23   :  { %1533 = vst [vmem:[#allocation2] sm:$0x80] %v1532_v25 }
 0xa2a   :  { %v1534_v10 = vld [vmem:[#allocation2] sm:$0xff] }
 0xa2b   :  { %1754 = vmatmul.mubr.f32.vlgmr.msra.gmra.mrb[32].mxu0 %v1534_v10 }
 0xafe   :  { %v1624_v19 = vpop.f32.mrb[32].mxu0 }
 0xaff   :  { %v1625_v5 = vadd.f32 %v1677_v12, %v1624_v19  ;;  %v1755_v55 = vpop.f32.mrb[33].mxu0 }
 0xb01   :  { %1628 = vst [vmem:[#allocation14] sm:$0xff] %v1625_v5 }
 0xb02   :  { %2057 = shalt.err (!%p2054_p10)
}
 0xb03   :  { %s2058_s30 = scalar_lea.hbm %s2468_s12, 128 }
 0xb04   :  { %p2059_p11 = scmp.ne.s32.totalorder %s2468_s12, %s2058_s30  ;;  %p2062_p12 = scmp.lt.u32.totalorder %s2058_s30, %s2468_s12 }
 0xb06   :  { %p2064_p13 = pnand %p2062_p12, %p2059_p11 }
 0xb08   :  { %2067 = shalt.err (!%p2064_p13)
}
 0xb09   :  { %1638 = dma.vmem_to_hbm [thread:$0]  %s1636_s5, 128, %s2468_s12, [#allocation5]  }
 0xb0a   :  { %2076 = dma.done.wait [#allocation5], 128  }
 0xb0b   :  { %2077 = vsyncadd [#allocation5], 4294967168 }
 0xb0c   :  { %1642 = vsyncpa [#allocation4], 1 }
 0xb0d   :  { %1643 = vsyncpa [#allocation7], 1 }
 0xb0e   :  { %1644 = vsyncpa [#allocation10], 1 }
 0xb0f   :  { %1645 = vsyncpa [#allocation13], 1 }
 0xb10   :  { %1646 = vsyncpa [#allocation5], 1 }

</bundles_post_ra>
